<compile_context>
chip_gen: v7x
topology: tpu7x:2x2x1
jax: 0.10.0
libtpu: 0.0.40
codegen_flags: <defaults>
</compile_context>

<pallas_src>
import jax
import jax.numpy as jnp
import numpy as np
from jax import lax
from jax.experimental import pallas as pl
from jax.experimental.pallas import tpu as pltpu


def _upsample_conv_kernel(xm_ref, xh_ref, w_ref, b_ref, o_ref, xs_ref):
    # xm_ref: (TH,   W+2, C)  body rows of the padded, original-res input
    # xh_ref: (2,    W+2, C)  2-row bottom halo
    # w_ref : (16, C, C)      phase weights, index = ((a*2+b)*2+r)*2+s
    # b_ref : (1, C) f32      bias
    # o_ref : (4, TH, W, C)   phase-separated output block (phase = a*2+b)
    # xs_ref: (TH+2, W+2, C)  VMEM scratch: body + halo assembled once
    TH, Wp, C = xm_ref.shape
    W = Wp - 2

    # Assemble the halo'd tile once per grid step (small VMEM copy; the loads
    # and stores co-issue with the MXU work below).
    xs_ref[0:TH, :, :] = xm_ref[...]
    xs_ref[TH:TH + 2, :, :] = xh_ref[...]

    # Bias folded into the f32 accumulator init (hoisted broadcast).
    bias = jnp.broadcast_to(b_ref[0:1, :], (TH * W, C)).astype(jnp.float32)

    # Sub-pixel identity: output pixel (2i+a, 2j+b) of conv3x3(upsample2x(x))
    # is a 2x2 conv of x at rows i+a+r-1, cols j+b+s-1 with pre-combined taps.
    for a in range(2):
        for b in range(2):
            acc = bias
            for r in range(2):
                for s in range(2):
                    tap = w_ref[((a * 2 + b) * 2 + r) * 2 + s]          # (C, C)
                    patch = xs_ref[a + r:a + r + TH, b + s:b + s + W, :]
                    acc = acc + jnp.dot(
                        patch.reshape(TH * W, C), tap,
                        preferred_element_type=jnp.float32)
            o_ref[a * 2 + b] = acc.reshape(TH, W, C).astype(o_ref.dtype)


def upsample_forward(x_nchw, weight_oihw, bias, *, row_tile=16,
                     compute_dtype=None):
    """Equivalent of Upsample.forward: nearest 2x upsample then Conv2d(C,C,3,1,1)."""
    N, C, H, W = x_nchw.shape
    out_dtype = x_nchw.dtype
    cdtype = jnp.dtype(compute_dtype) if compute_dtype is not None else jnp.dtype(out_dtype)
    Wp = W + 2
    csize = jnp.dtype(cdtype).itemsize
    osize = jnp.dtype(out_dtype).itemsize

    # ---- pick an even row tile TH that fits comfortably in VMEM ------------
    def vmem_est(th):
        body = 2 * th * Wp * C * csize            # input body block, x2 buffers
        halo = 2 * 2 * Wp * C * csize             # halo block, x2 buffers
        scratch = (th + 2) * Wp * C * csize       # assembled tile
        out = 2 * 4 * th * W * C * osize          # output block, x2 buffers
        wts = 2 * 16 * C * C * csize              # phase weights, x2 buffers
        return body + halo + scratch + out + wts + 4 * C * 4

    TH = max(2, min(int(row_tile), H))
    TH += TH % 2                                  # even TH -> halo block index trick
    budget = 36 * 1024 * 1024
    while TH > 2 and vmem_est(TH) > budget:
        TH = max(2, TH // 2 + (TH // 2) % 2)

    HT = -(-H // TH)                              # cdiv
    H_pad = HT * TH

    # ---- original-resolution input, NHWC, padded once (conv halo + tile pad)
    x = jnp.transpose(x_nchw, (0, 2, 3, 1)).astype(cdtype)           # (N,H,W,C)
    xp = jnp.pad(x, ((0, 0), (1, 1 + H_pad - H), (1, 1), (0, 0)))    # (N,H_pad+2,W+2,C)

    # ---- fold the nearest-2x upsample into 4 phase-dependent 2x2 kernels ---
    # M[a, r, kh] = 1 iff original tap kh contributes to phase-a tap r.
    w_hwio = jnp.transpose(weight_oihw, (2, 3, 1, 0)).astype(jnp.float32)
    M = jnp.array([[[1., 0., 0.], [0., 1., 1.]],
                   [[1., 1., 0.], [0., 0., 1.]]], dtype=jnp.float32)  # [a, r, kh]
    wph = jnp.einsum('ark,bsl,klio->abrsio', M, M, w_hwio)            # (2,2,2,2,Ci,Co)
    wph = wph.reshape(16, C, C).astype(cdtype)
    b2 = bias.reshape(1, C).astype(jnp.float32)

    out_ph = pl.pallas_call(
        _upsample_conv_kernel,
        out_shape=jax.ShapeDtypeStruct((4 * N, H_pad, W, C), out_dtype),
        grid_spec=pltpu.PrefetchScalarGridSpec(
            num_scalar_prefetch=0,
            grid=(N, HT),
            in_specs=[
                # body rows [h*TH, h*TH+TH) of the padded input
                pl.BlockSpec((None, TH, Wp, C), lambda n, h: (n, h, 0, 0)),
                # bottom halo rows [(h+1)*TH, (h+1)*TH+2)
                pl.BlockSpec((None, 2, Wp, C),
                             lambda n, h: (n, (h + 1) * (TH // 2), 0, 0)),
                pl.BlockSpec((16, C, C), lambda n, h: (0, 0, 0)),
                pl.BlockSpec((1, C), lambda n, h: (0, 0)),
            ],
            out_specs=pl.BlockSpec((4, TH, W, C), lambda n, h: (n, h, 0, 0)),
            scratch_shapes=[pltpu.VMEM((TH + 2, Wp, C), cdtype)],
        ),
        compiler_params=pltpu.CompilerParams(
            dimension_semantics=("parallel", "parallel"),
            vmem_limit_bytes=48 * 1024 * 1024,
        ),
    )(xp, xp, wph, b2)

    # ---- phase-separated (4N, H_pad, W, C) -> NCHW (N, C, 2H, 2W) ----------
    # Row 4n + (a*2+b) holds output pixels (2i+a, 2j+b) of batch n; this
    # interleave rides on the NCHW transpose we need anyway.
    out6 = out_ph.reshape(N, 2, 2, H_pad, W, C)            # [n, a, b, i, j, c]
    out = jnp.transpose(out6, (0, 5, 3, 1, 4, 2))          # [n, c, i, a, j, b]
    out = out.reshape(N, C, 2 * H_pad, 2 * W)
    return out[:, :, :2 * H, :]


def _reference(x_nchw, weight_oihw, bias):
    """Pure-JAX reference of the same forward pass (for correctness check)."""
    xu = jnp.repeat(jnp.repeat(x_nchw, 2, axis=2), 2, axis=3)
    y = lax.conv_general_dilated(
        xu,
        weight_oihw,
        window_strides=(1, 1),
        padding=((1, 1), (1, 1)),
        dimension_numbers=("NCHW", "OIHW", "NCHW"),
    )
    return y + bias.reshape(1, -1, 1, 1)


if __name__ == "__main__":
    key = jax.random.PRNGKey(0)
    kx, kw, kb = jax.random.split(key, 3)

    N, C, H, W = 2, 4, 16, 16
    x = jax.random.normal(kx, (N, C, H, W), dtype=jnp.float32)

    # Deterministic parameter init (same shapes as nn.Conv2d(C, C, 3, 1, 1)).
    fan_in = C * 3 * 3
    bound = 1.0 / np.sqrt(fan_in)
    weight = jax.random.uniform(
        kw, (C, C, 3, 3), minval=-bound, maxval=bound, dtype=jnp.float32
    )
    bias = jax.random.uniform(
        kb, (C,), minval=-bound, maxval=bound, dtype=jnp.float32
    )

    ref = jax.block_until_ready(_reference(x, weight, bias))

    # f32 path; row_tile=6 exercises the halo tiling and the H-not-divisible
    # padding path (H=16 -> 3 tiles of 6 rows, padded to 18).
    out = jax.block_until_ready(upsample_forward(x, weight, bias, row_tile=6))
    assert out.shape == (N, C, 2 * H, 2 * W), out.shape
    np.testing.assert_allclose(np.asarray(out), np.asarray(ref), rtol=1e-4, atol=1e-4)

    # bf16 compute path (activations/weights in bf16, f32 accumulation).
    out_bf16 = jax.block_until_ready(
        upsample_forward(x, weight, bias, row_tile=8, compute_dtype=jnp.bfloat16)
    )
    assert out_bf16.shape == (N, C, 2 * H, 2 * W), out_bf16.shape
    np.testing.assert_allclose(np.asarray(out_bf16), np.asarray(ref), rtol=0.1, atol=0.1)

    print("KERNEL_OK")
</pallas_src>

<mosaic_0001>
module attributes {stable_mosaic.version = 11 : i64} {
  func.func @_upsample_conv_kernel(%arg0: i32, %arg1: i32, %arg2: memref<1x6x18x4xf32, #tpu.memory_space<vmem>>, %arg3: memref<1x2x18x4xf32, #tpu.memory_space<vmem>>, %arg4: memref<16x4x4xf32, #tpu.memory_space<vmem>>, %arg5: memref<1x4xf32, #tpu.memory_space<vmem>>, %arg6: memref<4x6x16x4xf32, #tpu.memory_space<vmem>>, %arg7: memref<8x18x4xf32, #tpu.memory_space<vmem>>) attributes {dimension_semantics = [#tpu.dimension_semantics<parallel>, #tpu.dimension_semantics<parallel>], iteration_bounds = array<i64: 2, 3>, scalar_prefetch = 0 : i64, scratch_operands = 1 : i64, tpu.core_type = #tpu.core_type<tc>, window_params = [{transform_indices = @transform_0, window_bounds = array<i64: 1, 6, 18, 4>}, {transform_indices = @transform_1, window_bounds = array<i64: 1, 2, 18, 4>}, {pipeline_mode = #tpu.pipeline_mode<synchronous>, transform_indices = @transform_2, window_bounds = array<i64: 16, 4, 4>}, {pipeline_mode = #tpu.pipeline_mode<synchronous>, transform_indices = @transform_3, window_bounds = array<i64: 1, 4>}, {transform_indices = @transform_4, window_bounds = array<i64: 4, 6, 16, 4>}]} {
    %c0 = arith.constant 0 : index
    %c0_0 = arith.constant 0 : index
    %c0_1 = arith.constant 0 : index
    %c0_2 = arith.constant 0 : index
    %0 = vector.load %arg2[%c0, %c0_0, %c0_1, %c0_2] : memref<1x6x18x4xf32, #tpu.memory_space<vmem>>, vector<1x6x18x4xf32>
    %1 = vector.shape_cast %0 : vector<1x6x18x4xf32> to vector<6x18x4xf32>
    %c0_3 = arith.constant 0 : index
    %c0_4 = arith.constant 0 : index
    %c0_5 = arith.constant 0 : index
    %2 = vector.load %arg7[%c0_3, %c0_4, %c0_5] : memref<8x18x4xf32, #tpu.memory_space<vmem>>, vector<6x18x4xf32>
    tpu.vector_store %arg7[%c0_3, %c0_4, %c0_5], %1 {strides = array<i32>} : memref<8x18x4xf32, #tpu.memory_space<vmem>>, vector<6x18x4xf32>,
    %c0_6 = arith.constant 0 : index
    %c0_7 = arith.constant 0 : index
    %c0_8 = arith.constant 0 : index
    %c0_9 = arith.constant 0 : index
    %3 = vector.load %arg3[%c0_6, %c0_7, %c0_8, %c0_9] : memref<1x2x18x4xf32, #tpu.memory_space<vmem>>, vector<1x2x18x4xf32>
    %4 = vector.shape_cast %3 : vector<1x2x18x4xf32> to vector<2x18x4xf32>
    %c6 = arith.constant 6 : index
    %c0_10 = arith.constant 0 : index
    %c0_11 = arith.constant 0 : index
    %5 = vector.load %arg7[%c6, %c0_10, %c0_11] : memref<8x18x4xf32, #tpu.memory_space<vmem>>, vector<2x18x4xf32>
    tpu.vector_store %arg7[%c6, %c0_10, %c0_11], %4 {strides = array<i32>} : memref<8x18x4xf32, #tpu.memory_space<vmem>>, vector<2x18x4xf32>,
    %c0_12 = arith.constant 0 : index
    %c0_13 = arith.constant 0 : index
    %6 = vector.load %arg5[%c0_12, %c0_13] : memref<1x4xf32, #tpu.memory_space<vmem>>, vector<1x4xf32>
    %7 = vector.shape_cast %6 : vector<1x4xf32> to vector<1x4xf32>
    %8 = vector.broadcast %7 : vector<1x4xf32> to vector<96x4xf32>
    %c0_14 = arith.constant 0 : index
    %c0_15 = arith.constant 0 : index
    %c0_16 = arith.constant 0 : index
    %9 = vector.load %arg4[%c0_14, %c0_15, %c0_16] : memref<16x4x4xf32, #tpu.memory_space<vmem>>, vector<1x4x4xf32>
    %10 = vector.shape_cast %9 : vector<1x4x4xf32> to vector<4x4xf32>
    %c0_17 = arith.constant 0 : index
    %c0_18 = arith.constant 0 : index
    %c0_19 = arith.constant 0 : index
    %11 = vector.load %arg7[%c0_17, %c0_18, %c0_19] : memref<8x18x4xf32, #tpu.memory_space<vmem>>, vector<6x16x4xf32>
    %12 = vector.shape_cast %11 : vector<6x16x4xf32> to vector<96x4xf32>
    %cst = arith.constant dense<0.000000e+00> : vector<96x4xf32>
    %13 = tpu.matmul %12, %10, %cst {dimension_numbers = #tpu.dot_dimension_numbers<[1], [0], [0], [1], [0, 0, 1, 1], [], []>} : vector<96x4xf32>, vector<4x4xf32>, vector<96x4xf32> -> vector<96x4xf32>
    %14 = arith.addf %8, %13 : vector<96x4xf32>
    %c1 = arith.constant 1 : index
    %c0_20 = arith.constant 0 : index
    %c0_21 = arith.constant 0 : index
    %15 = vector.load %arg4[%c1, %c0_20, %c0_21] : memref<16x4x4xf32, #tpu.memory_space<vmem>>, vector<1x4x4xf32>
    %16 = vector.shape_cast %15 : vector<1x4x4xf32> to vector<4x4xf32>
    %c0_22 = arith.constant 0 : index
    %c1_23 = arith.constant 1 : index
    %c0_24 = arith.constant 0 : index
    %17 = vector.load %arg7[%c0_22, %c1_23, %c0_24] : memref<8x18x4xf32, #tpu.memory_space<vmem>>, vector<6x16x4xf32>
    %18 = vector.shape_cast %17 : vector<6x16x4xf32> to vector<96x4xf32>
    %cst_25 = arith.constant dense<0.000000e+00> : vector<96x4xf32>
    %19 = tpu.matmul %18, %16, %cst_25 {dimension_numbers = #tpu.dot_dimension_numbers<[1], [0], [0], [1], [0, 0, 1, 1], [], []>} : vector<96x4xf32>, vector<4x4xf32>, vector<96x4xf32> -> vector<96x4xf32>
    %20 = arith.addf %14, %19 : vector<96x4xf32>
    %c2 = arith.constant 2 : index
    %c0_26 = arith.constant 0 : index
    %c0_27 = arith.constant 0 : index
    %21 = vector.load %arg4[%c2, %c0_26, %c0_27] : memref<16x4x4xf32, #tpu.memory_space<vmem>>, vector<1x4x4xf32>
    %22 = vector.shape_cast %21 : vector<1x4x4xf32> to vector<4x4xf32>
    %c1_28 = arith.constant 1 : index
    %c0_29 = arith.constant 0 : index
    %c0_30 = arith.constant 0 : index
    %23 = vector.load %arg7[%c1_28, %c0_29, %c0_30] : memref<8x18x4xf32, #tpu.memory_space<vmem>>, vector<6x16x4xf32>
    %24 = vector.shape_cast %23 : vector<6x16x4xf32> to vector<96x4xf32>
    %cst_31 = arith.constant dense<0.000000e+00> : vector<96x4xf32>
    %25 = tpu.matmul %24, %22, %cst_31 {dimension_numbers = #tpu.dot_dimension_numbers<[1], [0], [0], [1], [0, 0, 1, 1], [], []>} : vector<96x4xf32>, vector<4x4xf32>, vector<96x4xf32> -> vector<96x4xf32>
    %26 = arith.addf %20, %25 : vector<96x4xf32>
    %c3 = arith.constant 3 : index
    %c0_32 = arith.constant 0 : index
    %c0_33 = arith.constant 0 : index
    %27 = vector.load %arg4[%c3, %c0_32, %c0_33] : memref<16x4x4xf32, #tpu.memory_space<vmem>>, vector<1x4x4xf32>
    %28 = vector.shape_cast %27 : vector<1x4x4xf32> to vector<4x4xf32>
    %c1_34 = arith.constant 1 : index
    %c1_35 = arith.constant 1 : index
    %c0_36 = arith.constant 0 : index
    %29 = vector.load %arg7[%c1_34, %c1_35, %c0_36] : memref<8x18x4xf32, #tpu.memory_space<vmem>>, vector<6x16x4xf32>
    %30 = vector.shape_cast %29 : vector<6x16x4xf32> to vector<96x4xf32>
    %cst_37 = arith.constant dense<0.000000e+00> : vector<96x4xf32>
    %31 = tpu.matmul %30, %28, %cst_37 {dimension_numbers = #tpu.dot_dimension_numbers<[1], [0], [0], [1], [0, 0, 1, 1], [], []>} : vector<96x4xf32>, vector<4x4xf32>, vector<96x4xf32> -> vector<96x4xf32>
    %32 = arith.addf %26, %31 : vector<96x4xf32>
    %33 = vector.shape_cast %32 : vector<96x4xf32> to vector<6x16x4xf32>
    %c0_38 = arith.constant 0 : index
    %c0_39 = arith.constant 0 : index
    %c0_40 = arith.constant 0 : index
    %c0_41 = arith.constant 0 : index
    %34 = vector.load %arg6[%c0_38, %c0_39, %c0_40, %c0_41] : memref<4x6x16x4xf32, #tpu.memory_space<vmem>>, vector<1x6x16x4xf32>
    %35 = vector.shape_cast %34 : vector<1x6x16x4xf32> to vector<6x16x4xf32>
    %36 = vector.shape_cast %33 : vector<6x16x4xf32> to vector<1x6x16x4xf32>
    tpu.vector_store %arg6[%c0_38, %c0_39, %c0_40, %c0_41], %36 {strides = array<i32>} : memref<4x6x16x4xf32, #tpu.memory_space<vmem>>, vector<1x6x16x4xf32>,
    %c4 = arith.constant 4 : index
    %c0_42 = arith.constant 0 : index
    %c0_43 = arith.constant 0 : index
    %37 = vector.load %arg4[%c4, %c0_42, %c0_43] : memref<16x4x4xf32, #tpu.memory_space<vmem>>, vector<1x4x4xf32>
    %38 = vector.shape_cast %37 : vector<1x4x4xf32> to vector<4x4xf32>
    %c0_44 = arith.constant 0 : index
    %c1_45 = arith.constant 1 : index
    %c0_46 = arith.constant 0 : index
    %39 = vector.load %arg7[%c0_44, %c1_45, %c0_46] : memref<8x18x4xf32, #tpu.memory_space<vmem>>, vector<6x16x4xf32>
    %40 = vector.shape_cast %39 : vector<6x16x4xf32> to vector<96x4xf32>
    %cst_47 = arith.constant dense<0.000000e+00> : vector<96x4xf32>
    %41 = tpu.matmul %40, %38, %cst_47 {dimension_numbers = #tpu.dot_dimension_numbers<[1], [0], [0], [1], [0, 0, 1, 1], [], []>} : vector<96x4xf32>, vector<4x4xf32>, vector<96x4xf32> -> vector<96x4xf32>
    %42 = arith.addf %8, %41 : vector<96x4xf32>
    %c5 = arith.constant 5 : index
    %c0_48 = arith.constant 0 : index
    %c0_49 = arith.constant 0 : index
    %43 = vector.load %arg4[%c5, %c0_48, %c0_49] : memref<16x4x4xf32, #tpu.memory_space<vmem>>, vector<1x4x4xf32>
    %44 = vector.shape_cast %43 : vector<1x4x4xf32> to vector<4x4xf32>
    %c0_50 = arith.constant 0 : index
    %c2_51 = arith.constant 2 : index
    %c0_52 = arith.constant 0 : index
    %45 = vector.load %arg7[%c0_50, %c2_51, %c0_52] : memref<8x18x4xf32, #tpu.memory_space<vmem>>, vector<6x16x4xf32>
    %46 = vector.shape_cast %45 : vector<6x16x4xf32> to vector<96x4xf32>
    %cst_53 = arith.constant dense<0.000000e+00> : vector<96x4xf32>
    %47 = tpu.matmul %46, %44, %cst_53 {dimension_numbers = #tpu.dot_dimension_numbers<[1], [0], [0], [1], [0, 0, 1, 1], [], []>} : vector<96x4xf32>, vector<4x4xf32>, vector<96x4xf32> -> vector<96x4xf32>
    %48 = arith.addf %42, %47 : vector<96x4xf32>
    %c6_54 = arith.constant 6 : index
    %c0_55 = arith.constant 0 : index
    %c0_56 = arith.constant 0 : index
    %49 = vector.load %arg4[%c6_54, %c0_55, %c0_56] : memref<16x4x4xf32, #tpu.memory_space<vmem>>, vector<1x4x4xf32>
    %50 = vector.shape_cast %49 : vector<1x4x4xf32> to vector<4x4xf32>
    %c1_57 = arith.constant 1 : index
    %c1_58 = arith.constant 1 : index
    %c0_59 = arith.constant 0 : index
    %51 = vector.load %arg7[%c1_57, %c1_58, %c0_59] : memref<8x18x4xf32, #tpu.memory_space<vmem>>, vector<6x16x4xf32>
    %52 = vector.shape_cast %51 : vector<6x16x4xf32> to vector<96x4xf32>
    %cst_60 = arith.constant dense<0.000000e+00> : vector<96x4xf32>
    %53 = tpu.matmul %52, %50, %cst_60 {dimension_numbers = #tpu.dot_dimension_numbers<[1], [0], [0], [1], [0, 0, 1, 1], [], []>} : vector<96x4xf32>, vector<4x4xf32>, vector<96x4xf32> -> vector<96x4xf32>
    %54 = arith.addf %48, %53 : vector<96x4xf32>
    %c7 = arith.constant 7 : index
    %c0_61 = arith.constant 0 : index
    %c0_62 = arith.constant 0 : index
    %55 = vector.load %arg4[%c7, %c0_61, %c0_62] : memref<16x4x4xf32, #tpu.memory_space<vmem>>, vector<1x4x4xf32>
    %56 = vector.shape_cast %55 : vector<1x4x4xf32> to vector<4x4xf32>
    %c1_63 = arith.constant 1 : index
    %c2_64 = arith.constant 2 : index
    %c0_65 = arith.constant 0 : index
    %57 = vector.load %arg7[%c1_63, %c2_64, %c0_65] : memref<8x18x4xf32, #tpu.memory_space<vmem>>, vector<6x16x4xf32>
    %58 = vector.shape_cast %57 : vector<6x16x4xf32> to vector<96x4xf32>
    %cst_66 = arith.constant dense<0.000000e+00> : vector<96x4xf32>
    %59 = tpu.matmul %58, %56, %cst_66 {dimension_numbers = #tpu.dot_dimension_numbers<[1], [0], [0], [1], [0, 0, 1, 1], [], []>} : vector<96x4xf32>, vector<4x4xf32>, vector<96x4xf32> -> vector<96x4xf32>
    %60 = arith.addf %54, %59 : vector<96x4xf32>
    %61 = vector.shape_cast %60 : vector<96x4xf32> to vector<6x16x4xf32>
    %c1_67 = arith.constant 1 : index
    %c0_68 = arith.constant 0 : index
    %c0_69 = arith.constant 0 : index
    %c0_70 = arith.constant 0 : index
    %62 = vector.load %arg6[%c1_67, %c0_68, %c0_69, %c0_70] : memref<4x6x16x4xf32, #tpu.memory_space<vmem>>, vector<1x6x16x4xf32>
    %63 = vector.shape_cast %62 : vector<1x6x16x4xf32> to vector<6x16x4xf32>
    %64 = vector.shape_cast %61 : vector<6x16x4xf32> to vector<1x6x16x4xf32>
    tpu.vector_store %arg6[%c1_67, %c0_68, %c0_69, %c0_70], %64 {strides = array<i32>} : memref<4x6x16x4xf32, #tpu.memory_space<vmem>>, vector<1x6x16x4xf32>,
    %c8 = arith.constant 8 : index
    %c0_71 = arith.constant 0 : index
    %c0_72 = arith.constant 0 : index
    %65 = vector.load %arg4[%c8, %c0_71, %c0_72] : memref<16x4x4xf32, #tpu.memory_space<vmem>>, vector<1x4x4xf32>
    %66 = vector.shape_cast %65 : vector<1x4x4xf32> to vector<4x4xf32>
    %c1_73 = arith.constant 1 : index
    %c0_74 = arith.constant 0 : index
    %c0_75 = arith.constant 0 : index
    %67 = vector.load %arg7[%c1_73, %c0_74, %c0_75] : memref<8x18x4xf32, #tpu.memory_space<vmem>>, vector<6x16x4xf32>
    %68 = vector.shape_cast %67 : vector<6x16x4xf32> to vector<96x4xf32>
    %cst_76 = arith.constant dense<0.000000e+00> : vector<96x4xf32>
    %69 = tpu.matmul %68, %66, %cst_76 {dimension_numbers = #tpu.dot_dimension_numbers<[1], [0], [0], [1], [0, 0, 1, 1], [], []>} : vector<96x4xf32>, vector<4x4xf32>, vector<96x4xf32> -> vector<96x4xf32>
    %70 = arith.addf %8, %69 : vector<96x4xf32>
    %c9 = arith.constant 9 : index
    %c0_77 = arith.constant 0 : index
    %c0_78 = arith.constant 0 : index
    %71 = vector.load %arg4[%c9, %c0_77, %c0_78] : memref<16x4x4xf32, #tpu.memory_space<vmem>>, vector<1x4x4xf32>
    %72 = vector.shape_cast %71 : vector<1x4x4xf32> to vector<4x4xf32>
    %c1_79 = arith.constant 1 : index
    %c1_80 = arith.constant 1 : index
    %c0_81 = arith.constant 0 : index
    %73 = vector.load %arg7[%c1_79, %c1_80, %c0_81] : memref<8x18x4xf32, #tpu.memory_space<vmem>>, vector<6x16x4xf32>
    %74 = vector.shape_cast %73 : vector<6x16x4xf32> to vector<96x4xf32>
    %cst_82 = arith.constant dense<0.000000e+00> : vector<96x4xf32>
    %75 = tpu.matmul %74, %72, %cst_82 {dimension_numbers = #tpu.dot_dimension_numbers<[1], [0], [0], [1], [0, 0, 1, 1], [], []>} : vector<96x4xf32>, vector<4x4xf32>, vector<96x4xf32> -> vector<96x4xf32>
    %76 = arith.addf %70, %75 : vector<96x4xf32>
    %c10 = arith.constant 10 : index
    %c0_83 = arith.constant 0 : index
    %c0_84 = arith.constant 0 : index
    %77 = vector.load %arg4[%c10, %c0_83, %c0_84] : memref<16x4x4xf32, #tpu.memory_space<vmem>>, vector<1x4x4xf32>
    %78 = vector.shape_cast %77 : vector<1x4x4xf32> to vector<4x4xf32>
    %c2_85 = arith.constant 2 : index
    %c0_86 = arith.constant 0 : index
    %c0_87 = arith.constant 0 : index
    %79 = vector.load %arg7[%c2_85, %c0_86, %c0_87] : memref<8x18x4xf32, #tpu.memory_space<vmem>>, vector<6x16x4xf32>
    %80 = vector.shape_cast %79 : vector<6x16x4xf32> to vector<96x4xf32>
    %cst_88 = arith.constant dense<0.000000e+00> : vector<96x4xf32>
    %81 = tpu.matmul %80, %78, %cst_88 {dimension_numbers = #tpu.dot_dimension_numbers<[1], [0], [0], [1], [0, 0, 1, 1], [], []>} : vector<96x4xf32>, vector<4x4xf32>, vector<96x4xf32> -> vector<96x4xf32>
    %82 = arith.addf %76, %81 : vector<96x4xf32>
    %c11 = arith.constant 11 : index
    %c0_89 = arith.constant 0 : index
    %c0_90 = arith.constant 0 : index
    %83 = vector.load %arg4[%c11, %c0_89, %c0_90] : memref<16x4x4xf32, #tpu.memory_space<vmem>>, vector<1x4x4xf32>
    %84 = vector.shape_cast %83 : vector<1x4x4xf32> to vector<4x4xf32>
    %c2_91 = arith.constant 2 : index
    %c1_92 = arith.constant 1 : index
    %c0_93 = arith.constant 0 : index
    %85 = vector.load %arg7[%c2_91, %c1_92, %c0_93] : memref<8x18x4xf32, #tpu.memory_space<vmem>>, vector<6x16x4xf32>
    %86 = vector.shape_cast %85 : vector<6x16x4xf32> to vector<96x4xf32>
    %cst_94 = arith.constant dense<0.000000e+00> : vector<96x4xf32>
    %87 = tpu.matmul %86, %84, %cst_94 {dimension_numbers = #tpu.dot_dimension_numbers<[1], [0], [0], [1], [0, 0, 1, 1], [], []>} : vector<96x4xf32>, vector<4x4xf32>, vector<96x4xf32> -> vector<96x4xf32>
    %88 = arith.addf %82, %87 : vector<96x4xf32>
    %89 = vector.shape_cast %88 : vector<96x4xf32> to vector<6x16x4xf32>
    %c2_95 = arith.constant 2 : index
    %c0_96 = arith.constant 0 : index
    %c0_97 = arith.constant 0 : index
    %c0_98 = arith.constant 0 : index
    %90 = vector.load %arg6[%c2_95, %c0_96, %c0_97, %c0_98] : memref<4x6x16x4xf32, #tpu.memory_space<vmem>>, vector<1x6x16x4xf32>
    %91 = vector.shape_cast %90 : vector<1x6x16x4xf32> to vector<6x16x4xf32>
    %92 = vector.shape_cast %89 : vector<6x16x4xf32> to vector<1x6x16x4xf32>
    tpu.vector_store %arg6[%c2_95, %c0_96, %c0_97, %c0_98], %92 {strides = array<i32>} : memref<4x6x16x4xf32, #tpu.memory_space<vmem>>, vector<1x6x16x4xf32>,
    %c12 = arith.constant 12 : index
    %c0_99 = arith.constant 0 : index
    %c0_100 = arith.constant 0 : index
    %93 = vector.load %arg4[%c12, %c0_99, %c0_100] : memref<16x4x4xf32, #tpu.memory_space<vmem>>, vector<1x4x4xf32>
    %94 = vector.shape_cast %93 : vector<1x4x4xf32> to vector<4x4xf32>
    %c1_101 = arith.constant 1 : index
    %c1_102 = arith.constant 1 : index
    %c0_103 = arith.constant 0 : index
    %95 = vector.load %arg7[%c1_101, %c1_102, %c0_103] : memref<8x18x4xf32, #tpu.memory_space<vmem>>, vector<6x16x4xf32>
    %96 = vector.shape_cast %95 : vector<6x16x4xf32> to vector<96x4xf32>
    %cst_104 = arith.constant dense<0.000000e+00> : vector<96x4xf32>
    %97 = tpu.matmul %96, %94, %cst_104 {dimension_numbers = #tpu.dot_dimension_numbers<[1], [0], [0], [1], [0, 0, 1, 1], [], []>} : vector<96x4xf32>, vector<4x4xf32>, vector<96x4xf32> -> vector<96x4xf32>
    %98 = arith.addf %8, %97 : vector<96x4xf32>
    %c13 = arith.constant 13 : index
    %c0_105 = arith.constant 0 : index
    %c0_106 = arith.constant 0 : index
    %99 = vector.load %arg4[%c13, %c0_105, %c0_106] : memref<16x4x4xf32, #tpu.memory_space<vmem>>, vector<1x4x4xf32>
    %100 = vector.shape_cast %99 : vector<1x4x4xf32> to vector<4x4xf32>
    %c1_107 = arith.constant 1 : index
    %c2_108 = arith.constant 2 : index
    %c0_109 = arith.constant 0 : index
    %101 = vector.load %arg7[%c1_107, %c2_108, %c0_109] : memref<8x18x4xf32, #tpu.memory_space<vmem>>, vector<6x16x4xf32>
    %102 = vector.shape_cast %101 : vector<6x16x4xf32> to vector<96x4xf32>
    %cst_110 = arith.constant dense<0.000000e+00> : vector<96x4xf32>
    %103 = tpu.matmul %102, %100, %cst_110 {dimension_numbers = #tpu.dot_dimension_numbers<[1], [0], [0], [1], [0, 0, 1, 1], [], []>} : vector<96x4xf32>, vector<4x4xf32>, vector<96x4xf32> -> vector<96x4xf32>
    %104 = arith.addf %98, %103 : vector<96x4xf32>
    %c14 = arith.constant 14 : index
    %c0_111 = arith.constant 0 : index
    %c0_112 = arith.constant 0 : index
    %105 = vector.load %arg4[%c14, %c0_111, %c0_112] : memref<16x4x4xf32, #tpu.memory_space<vmem>>, vector<1x4x4xf32>
    %106 = vector.shape_cast %105 : vector<1x4x4xf32> to vector<4x4xf32>
    %c2_113 = arith.constant 2 : index
    %c1_114 = arith.constant 1 : index
    %c0_115 = arith.constant 0 : index
    %107 = vector.load %arg7[%c2_113, %c1_114, %c0_115] : memref<8x18x4xf32, #tpu.memory_space<vmem>>, vector<6x16x4xf32>
    %108 = vector.shape_cast %107 : vector<6x16x4xf32> to vector<96x4xf32>
    %cst_116 = arith.constant dense<0.000000e+00> : vector<96x4xf32>
    %109 = tpu.matmul %108, %106, %cst_116 {dimension_numbers = #tpu.dot_dimension_numbers<[1], [0], [0], [1], [0, 0, 1, 1], [], []>} : vector<96x4xf32>, vector<4x4xf32>, vector<96x4xf32> -> vector<96x4xf32>
    %110 = arith.addf %104, %109 : vector<96x4xf32>
    %c15 = arith.constant 15 : index
    %c0_117 = arith.constant 0 : index
    %c0_118 = arith.constant 0 : index
    %111 = vector.load %arg4[%c15, %c0_117, %c0_118] : memref<16x4x4xf32, #tpu.memory_space<vmem>>, vector<1x4x4xf32>
    %112 = vector.shape_cast %111 : vector<1x4x4xf32> to vector<4x4xf32>
    %c2_119 = arith.constant 2 : index
    %c2_120 = arith.constant 2 : index
    %c0_121 = arith.constant 0 : index
    %113 = vector.load %arg7[%c2_119, %c2_120, %c0_121] : memref<8x18x4xf32, #tpu.memory_space<vmem>>, vector<6x16x4xf32>
    %114 = vector.shape_cast %113 : vector<6x16x4xf32> to vector<96x4xf32>
    %cst_122 = arith.constant dense<0.000000e+00> : vector<96x4xf32>
    %115 = tpu.matmul %114, %112, %cst_122 {dimension_numbers = #tpu.dot_dimension_numbers<[1], [0], [0], [1], [0, 0, 1, 1], [], []>} : vector<96x4xf32>, vector<4x4xf32>, vector<96x4xf32> -> vector<96x4xf32>
    %116 = arith.addf %110, %115 : vector<96x4xf32>
    %117 = vector.shape_cast %116 : vector<96x4xf32> to vector<6x16x4xf32>
    %c3_123 = arith.constant 3 : index
    %c0_124 = arith.constant 0 : index
    %c0_125 = arith.constant 0 : index
    %c0_126 = arith.constant 0 : index
    %118 = vector.load %arg6[%c3_123, %c0_124, %c0_125, %c0_126] : memref<4x6x16x4xf32, #tpu.memory_space<vmem>>, vector<1x6x16x4xf32>
    %119 = vector.shape_cast %118 : vector<1x6x16x4xf32> to vector<6x16x4xf32>
    %120 = vector.shape_cast %117 : vector<6x16x4xf32> to vector<1x6x16x4xf32>
    tpu.vector_store %arg6[%c3_123, %c0_124, %c0_125, %c0_126], %120 {strides = array<i32>} : memref<4x6x16x4xf32, #tpu.memory_space<vmem>>, vector<1x6x16x4xf32>,
    return
  }
  func.func @transform_0(%arg0: i32, %arg1: i32) -> (i32, i32, i32, i32) {
    %c0_i32 = arith.constant 0 : i32
    %c0_i32_0 = arith.constant 0 : i32
    %c0_i32_1 = arith.constant 0 : i32
    return %arg0, %arg1, %c0_i32, %c0_i32_0 : i32, i32, i32, i32
  }
  func.func @transform_1(%arg0: i32, %arg1: i32) -> (i32, i32, i32, i32) {
    %c1_i32 = arith.constant 1 : i32
    %0 = arith.addi %arg1, %c1_i32 : i32
    %c3_i32 = arith.constant 3 : i32
    %1 = arith.muli %0, %c3_i32 : i32
    %c0_i32 = arith.constant 0 : i32
    %c0_i32_0 = arith.constant 0 : i32
    %c0_i32_1 = arith.constant 0 : i32
    return %arg0, %1, %c0_i32, %c0_i32_0 : i32, i32, i32, i32
  }
  func.func @transform_2(%arg0: i32, %arg1: i32) -> (i32, i32, i32) {
    %c0_i32 = arith.constant 0 : i32
    %c0_i32_0 = arith.constant 0 : i32
    %c0_i32_1 = arith.constant 0 : i32
    %c0_i32_2 = arith.constant 0 : i32
    return %c0_i32, %c0_i32_0, %c0_i32_1 : i32, i32, i32
  }
  func.func @transform_3(%arg0: i32, %arg1: i32) -> (i32, i32) {
    %c0_i32 = arith.constant 0 : i32
    %c0_i32_0 = arith.constant 0 : i32
    %c0_i32_1 = arith.constant 0 : i32
    return %c0_i32, %c0_i32_0 : i32, i32
  }
  func.func @transform_4(%arg0: i32, %arg1: i32) -> (i32, i32, i32, i32) {
    %c0_i32 = arith.constant 0 : i32
    %c0_i32_0 = arith.constant 0 : i32
    %c0_i32_1 = arith.constant 0 : i32
    return %arg0, %arg1, %c0_i32, %c0_i32_0 : i32, i32, i32, i32
  }
}

</mosaic_0001>

<bundles_post_ra>
// kernel: tpu_custom_call.1
= control target key start
LH: loop header
LB: loop body
LE: loop exit
PB: predicated region body
PF: predicated region fallthrough
CT: control target
= control target key end

     0   :  { %9 = vsyncpa [#allocation4], 0  ;;  %s4993_s15 = smov 0   ;;  %s4995_s16 = smov 0   ;;  %s5962_s0 = inlined_call_operand.vmem [shape: f32[2,20,18,4], index: 0, kind: input, shape index: {}]   ;;  %s5963_s1 = inlined_call_operand.vmem [shape: f32[2,20,18,4], index: 1, kind: input, shape index: {}]   ;;  %s5964_s2 = inlined_call_operand.vmem [shape: f32[16,4,4], index: 2, kind: input, shape index: {}]   ;;  %s5965_s3 = inlined_call_operand.hbm [shape: f32[1,4], index: 3, kind: input, shape index: {}]   ;;  %s5966_s4 = inlined_call_operand.vmem [shape: f32[8,18,16,4], index: 4, kind: output, shape index: {}]  }
   0x1   :  { %s4997_s17 = smov 0   ;;  %s4999_s18 = smov 0  }
   0x2   :  { %s5001_s19 = smov 0   ;;  %s5003_s20 = smov 0  }
   0x3   :  { %s5005_s21 = smov 0  }
   0x4 LB: > { %s3810_s22 = sadd.s32 4294967295, %s4965_s21   ;;  %s24_s23 = sadd.s32 1, %s4957_s19  ;;  %s4965_s21 = sphi %s5005_s21, %s15_s21   ;;  %s4961_s20 = sphi %s5003_s20, %s5982_s20   ;;  %s4957_s19 = sphi %s5001_s19, %s5981_s19   ;;  %s4953_s18 = sphi %s4999_s18, %s5980_s18   ;;  %s4949_s17 = sphi %s4997_s17, %s5979_s17   ;;  %s4945_s16 = sphi %s4995_s16, %s5978_s16   ;;  %s4941_s15 = sphi %s4993_s15, %s5977_s15  }
   0x5   : > { %p25_p0 = scmp.ge.s32.totalorder %s24_s23, 3  ;;  %s27_s24 = sadd.s32 1, %s4961_s20 }
   0x6   : > { %s138_s25 = sadd.s32 1, %s4945_s16  ;;  %p148_p1 = scmp.ne.s32.totalorder %s4945_s16, %s4941_s15 }
   0x7   : > { %s5984_s23 = smov (%p25_p0, %s24_s23), 0  ;;  %s5986_s24 = smov (!%p25_p0, %s27_s24), %s4961_s20 }
   0x8   : > { %s134_s26 = ssub.s32 %s4957_s19, %s5984_s23  ;;  %p149_p2 = scmp.eq.s32.totalorder %s3810_s22, 5 }
   0x9   : > { %p29_p3 = scmp.ge.s32.totalorder %s5986_s24, 2  ;;  %p3812_p4 = scmp.ge.s32.totalorder %s4965_s21, 1 }
   0xa   : > { %p5040_p5 = por %p149_p2, %p148_p1  ;;  %p162_p6 = scmp.lt.s32.totalorder %s4965_s21, 7 }
   0xb   : > { %s5988_s24 = smov (%p29_p3, %s5986_s24), 0  ;;  %p5053_p8 = scmp.eq.s32.totalorder %s3810_s22, 0 }
   0xc   : > { %s5970_s27 = scalar_select %p5040_p5, 1, 0 }
   0xd   : > { %p5047_p7 = pnand %p3812_p4, %p162_p6  ;;  %s133_s29 = ssub.s32 %s4961_s20, %s5988_s24 }
   0xe   : > { %s5972_s30 = scalar_select %p5053_p8, 1, 0 }
   0xf   : > { %s5971_s28 = scalar_select %p5047_p7, 1, 0 }
  0x10   : > { %s135_s5 = sor.u32 %s134_s26, %s133_s29  ;;  %p4816_p9 = pneg %p5047_p7 }
  0x11   : > { %p136_p10 = scmp.eq.s32.totalorder %s135_s5, 0  ;;  %s4967_s6 = smov [#allocation3]  }
  0x12   : > { %s178_s7 = sshll.u32 %s4967_s6, 4  ;;  %p5061_p11 = pnand %p5053_p8, %p4816_p9  ;;  %s179_s7 = int_to_ptr.vmem [resolvable:$true] %s178_s7 }
  0x13   : > { %s5066_s9 = scalar_select %p136_p10, %s4945_s16, %s138_s25  }
  0x14   : > { %s4879_s12 = scalar_lea.hbm %s5965_s3, 16  ;;  %p4881_p13 = pneg %p5061_p11 }
  0x15   : > { %p4880_p12 = scmp.ne.s32.totalorder %s5965_s3, %s4879_s12  ;;  %p4886_p2 = scmp.lt.u32.totalorder %s4879_s12, %s5965_s3 }
  0x17   : > { %p4882_p0 = pnand %p4881_p13, %p4880_p12 }
  0x19   : > { %p4883_p1 = pneg %p4882_p0 }
  0x1b   : > { %p4888_p3 = pnand %p4886_p2, %p4883_p1 }
  0x1d   : > { %4891 = shalt.err (!%p4888_p3)
}
  0x1e   : > { %s4892_s25 = scalar_lea.vmem %s179_s7, 16  ;;  %s4899_s29 = scalar_lea.vmem %s179_s7, 32 }
  0x1f   : > { %p4893_p4 = scmp.ne.s32.totalorder %s179_s7, %s4892_s25  ;;  %p4900_p10 = scmp.lt.s32.totalorder %s179_s7, %s179_s7 }
  0x20   : > { %p4901_p5 = scmp.lt.s32.totalorder %s4899_s29, %s4892_s25 }
  0x21   : > { %p4895_p6 = pnand %p4893_p4, %p4881_p13 }
  0x22   : > { %p4902_p8 = por %p4901_p5, %p4900_p10 }
  0x23   : > { %p4896_p9 = pneg %p4895_p6 }
  0x25   : > { %p4903_p7 = pnand %p4902_p8, %p4896_p9 }
  0x27   : > { %4906 = shalt.err (!%p4903_p7)
}
  0x28   : > { %4819 = dma.hbm_to_vmem [thread:$0]  (!%p5061_p11), %s5965_s3, 16, %s179_s7, [#allocation4]  }
  0x29   : > { %p5974_p12 = scmp.ne.s32.totalorder %s5971_s28, 0 }
  0x2a   : > { %p5975_p0 = scmp.ne.s32.totalorder (!%p5974_p12), %s5972_s30, 0 }
  0x2b   : > { %233 = sbr.rel (%p5974_p12) target bundleno = 487 (0x1e7), region = 36 }
  0x32   : > { %4936 = dma.done.wait (%p5975_p0), [#allocation4], 16  }
  0x33   : > { %4938 = vsyncadd (%p5975_p0), [#allocation4], 4294967280  ;;  %s280_s10 = smul.u32 6, %s4949_s17  ;;  %p286_p5 = scmp.lt.s32.totalorder %s4953_s18, 1  ;;  %vm425_vm0 = vcmask 1043456   ;;  %vm336_vm1 = vcmask 31744  }
  0x34   : > { %s301_s8 = sadd.s32 1, %s4949_s17  ;;  %v376_v0 = vld [vmem:[%s5964_s2] sm:$0xf]  ;;  %v3876_v1 = vld [vmem:[%s5964_s2 + $0x10] sm:$0xf]  ;;  %vm339_vm2 = vcmask 25600  }
  0x35   : > { %s5094_s11 = scalar_select %p286_p5, %s4953_s18, 1  ;;  %4295 = vmatprep.subr.msk.mxu0 %vm425_vm0, %v376_v0  ;;  %4375 = vmatprep.subr.msk.mxu1 %vm425_vm0, %v3876_v1  ;;  %v5108_v2 = vld [vmem:[%s5964_s2 + $0x4] sm:$0xf]  ;;  %v5113_v3 = vld [vmem:[%s5964_s2 + $0x14] sm:$0xf] }
  0x36   : > { %p288_p7 = scmp.lt.s32.totalorder %s280_s10, 19  ;;  %s3818_s28 = smul.u32 6, %s301_s8  ;;  %4296 = vmatpush3.msk.msra.mxu0 %vm425_vm0, %v376_v0  ;;  %4376 = vmatpush3.msk.msra.mxu1 %vm425_vm0, %v3876_v1  ;;  %v3848_v31 = vld [vmem:[%s5964_s2 + $0x8] sm:$0xf]  ;;  %v3904_v32 = vld [vmem:[%s5964_s2 + $0x18] sm:$0xf] }
  0x37   : > { %s4809_s7 = smul.u32 60, %s5094_s11  ;;  %4315 = vmatprep.subr.msk.mxu0 %vm425_vm0, %v5108_v2  ;;  %4395 = vmatprep.subr.msk.mxu1 %vm425_vm0, %v5113_v3  ;;  %v3862_v54 = vld [vmem:[%s5964_s2 + $0xc] sm:$0xf]  ;;  %v3918_v55 = vld [vmem:[%s5964_s2 + $0x1c] sm:$0xf]  ;;  %p5976_p11 = scmp.ne.s32.totalorder %s5970_s27, 0 }
  0x38   : > { %s5990_s10 = smov (!%p288_p7, %s280_s10), 19  ;;  %p306_p8 = scmp.lt.s32.totalorder %s3818_s28, 19 }
  0x39   : > { %s4808_s22 = smul.u32 3, %s5990_s10 }
  0x3a   : > { %s5992_s28 = smov (!%p306_p8, %s3818_s28), 19 }
  0x3b   : > { %s292_s6 = sadd.s32 %s4809_s7, %s4808_s22  ;;  %s4810_s30 = smul.u32 3, %s5992_s28 }
  0x3c   : > { %s3817_s10 = sshll.u32 %s292_s6, 3  ;;  %s4811_s22 = smul.u32 (%p5976_p11), 144, %s4953_s18 }
  0x3d   : > { %s5126_s13 = scalar_lea.vmem %s5962_s0, %s3817_s10  ;;  %s310_s28 = sadd.s32 %s4810_s30, %s4809_s7 }
  0x3e   : > { %v318_v4 = vld [vmem:[%s5126_s13] sm:$0xff]  ;;  %v319_v5 = vld [vmem:[%s5126_s13 + $0x8] sm:$0xff]  ;;  %v320_v6 = vld [vmem:[%s5126_s13 + $0x10] sm:$0x3]  ;;  %s3819_s14 = sshll.u32 %s310_s28, 3  ;;  %s277_s30 = sand.u32 1, %s4941_s15  }
  0x3f   : > { %337 = vst.msk [vmem:[#allocation2] sm:$0xff] %vm336_vm1, %v318_v4  ;;  %338 = vst.msk [vmem:[#allocation2 + $0x8] sm:$0xff] %vm336_vm1, %v319_v5  ;;  %v321_v7 = vld [vmem:[%s5126_s13 + $0x18] sm:$0xff]  ;;  %v322_v8 = vld [vmem:[%s5126_s13 + $0x20] sm:$0xff]  ;;  %s5169_s11 = scalar_lea.vmem %s5963_s1, %s3819_s14  ;;  %s4807_s28 = smul.u32 384, %s277_s30 }
  0x40   : > { %340 = vst.msk [vmem:[#allocation2 + $0x10] sm:$0x3] %vm339_vm2, %v320_v6  ;;  %v323_v9 = vld [vmem:[%s5126_s13 + $0x28] sm:$0x3]  ;;  %v324_v10 = vld [vmem:[%s5126_s13 + $0x30] sm:$0xff]  ;;  %v325_v11 = vld [vmem:[%s5126_s13 + $0x38] sm:$0xff] }
  0x41   : > { %341 = vst.msk [vmem:[#allocation2 + $0x18] sm:$0xff] %vm336_vm1, %v321_v7  ;;  %342 = vst.msk [vmem:[#allocation2 + $0x20] sm:$0xff] %vm336_vm1, %v322_v8  ;;  %v326_v12 = vld [vmem:[%s5126_s13 + $0x40] sm:$0x3]  ;;  %v327_v13 = vld [vmem:[%s5126_s13 + $0x48] sm:$0xff]  ;;  %s5694_s14 = scalar_lea.vmem [#allocation5], %s4807_s28 }
  0x42   : > { %343 = vst.msk [vmem:[#allocation2 + $0x28] sm:$0x3] %vm339_vm2, %v323_v9  ;;  %346 = vst.msk [vmem:[#allocation2 + $0x40] sm:$0x3] %vm339_vm2, %v326_v12  ;;  %v328_v14 = vld [vmem:[%s5126_s13 + $0x50] sm:$0xff]  ;;  %v330_v16 = vld [vmem:[%s5126_s13 + $0x60] sm:$0xff] }
  0x43   : > { %344 = vst.msk [vmem:[#allocation2 + $0x30] sm:$0xff] %vm336_vm1, %v324_v10  ;;  %345 = vst.msk [vmem:[#allocation2 + $0x38] sm:$0xff] %vm336_vm1, %v325_v11  ;;  %v329_v15 = vld [vmem:[%s5126_s13 + $0x58] sm:$0x3]  ;;  %v331_v17 = vld [vmem:[%s5126_s13 + $0x68] sm:$0xff]  ;;  %s4086_s15 = smul.u32 (%p5976_p11), 12, %s4949_s17 }
  0x44   : > { %347 = vst.msk [vmem:[#allocation2 + $0x48] sm:$0xff] %vm336_vm1, %v327_v13  ;;  %348 = vst.msk [vmem:[#allocation2 + $0x50] sm:$0xff] %vm336_vm1, %v328_v14  ;;  %v332_v18 = vld [vmem:[%s5126_s13 + $0x70] sm:$0x3]  ;;  %v333_v19 = vld [vmem:[%s5126_s13 + $0x78] sm:$0xff] }
  0x45   : > { %349 = vst.msk [vmem:[#allocation2 + $0x58] sm:$0x3] %vm339_vm2, %v329_v15  ;;  %352 = vst.msk [vmem:[#allocation2 + $0x70] sm:$0x3] %vm339_vm2, %v332_v18  ;;  %v334_v20 = vld [vmem:[%s5126_s13 + $0x80] sm:$0xff]  ;;  %v357_v23 = vld [vmem:[%s5169_s11 + $0x8] sm:$0xff]  ;;  %s3480_s27 = sadd.s32 (%p5976_p11), %s4811_s22, %s4086_s15 }
  0x46   : > { %350 = vst.msk [vmem:[#allocation2 + $0x60] sm:$0xff] %vm336_vm1, %v330_v16  ;;  %351 = vst.msk [vmem:[#allocation2 + $0x68] sm:$0xff] %vm336_vm1, %v331_v17  ;;  %v335_v21 = vld [vmem:[%s5126_s13 + $0x88] sm:$0x3]  ;;  %v356_v22 = vld [vmem:[%s5169_s11] sm:$0xff]  ;;  %s4083_s17 = sshll.u32 (%p5976_p11), %s3480_s27, 3 }
  0x47   : > { %353 = vst.msk [vmem:[#allocation2 + $0x78] sm:$0xff] %vm336_vm1, %v333_v19  ;;  %354 = vst.msk [vmem:[#allocation2 + $0x80] sm:$0xff] %vm336_vm1, %v334_v20  ;;  %v358_v24 = vld [vmem:[%s5169_s11 + $0x10] sm:$0x3]  ;;  %v377_v25 = vld [vmem:[#allocation2] sm:$0xff] }
  0x48   : > { %355 = vst.msk [vmem:[#allocation2 + $0x88] sm:$0x3] %vm339_vm2, %v335_v21  ;;  %v1151_v26 = vld [vmem:[#allocation2 + $0x1] sm:$0xff]  ;;  %365 = vst.msk [vmem:[#allocation2 + $0xa0] sm:$0x3] %vm339_vm2, %v358_v24  ;;  %4297 = vmatprep.mubr.msk.f32.mxu0 %vm336_vm1, %v377_v25  ;;  %v1152_v28 = vld [vmem:[#allocation2 + $0x9] sm:$0xff] }
  0x49   : > { %v378_v27 = vld [vmem:[#allocation2 + $0x8] sm:$0xff]  ;;  %363 = vst.msk [vmem:[#allocation2 + $0x90] sm:$0xff] %vm336_vm1, %v356_v22  ;;  %364 = vst.msk [vmem:[#allocation2 + $0x98] sm:$0xff] %vm336_vm1, %v357_v23  ;;  %4377 = vmatprep.mubr.msk.f32.mxu1 %vm336_vm1, %v1151_v26  ;;  %v5179_v29 = vld [vmem:[#allocation2 + $0x18] sm:$0xff] }
  0x4a   : > { %v5181_v30 = vld [vmem:[#allocation2 + $0x19] sm:$0xff]  ;;  %4298 = vmatmul.mubr.msk.f32.vlgmr.msra.gmra.mrb[0].mxu0 %vm336_vm1, %v378_v27  ;;  %4378 = vmatmul.mubr.msk.f32.vlgmr.msra.gmra.mrb[0].mxu1 %vm336_vm1, %v1152_v28  ;;  %v5197_v34 = vld [vmem:[#allocation2 + $0x21] sm:$0xff]  ;;  %v5203_v35 = vld [vmem:[#allocation2 + $0x30] sm:$0xff] }
  0x4b   : > { %4316 = vmatpush3.msk.msra.mxu0 %vm425_vm0, %v5108_v2  ;;  %4396 = vmatpush3.msk.msra.mxu1 %vm425_vm0, %v5113_v3  ;;  %v5195_v33 = vld [vmem:[#allocation2 + $0x20] sm:$0xff]  ;;  %v5205_v36 = vld [vmem:[#allocation2 + $0x31] sm:$0xff]  ;;  %v5221_v39 = vld [vmem:[#allocation2 + $0x48] sm:$0xff] }
  0x4c   : > { %4300 = vmatprep.mubr.msk.f32.mxu0 %vm336_vm1, %v5179_v29  ;;  %4380 = vmatprep.mubr.msk.f32.mxu1 %vm336_vm1, %v5181_v30  ;;  %v5217_v37 = vld [vmem:[#allocation2 + $0x38] sm:$0xff]  ;;  %v5223_v40 = vld [vmem:[#allocation2 + $0x49] sm:$0xff]  ;;  %v360_v59 = vld [vmem:[%s5169_s11 + $0x20] sm:$0xff] }
  0x4d   : > { %4335 = vmatprep.subr.msk.mxu0 %vm425_vm0, %v3848_v31  ;;  %4415 = vmatprep.subr.msk.mxu1 %vm425_vm0, %v3904_v32  ;;  %v5219_v38 = vld [vmem:[#allocation2 + $0x39] sm:$0xff]  ;;  %v5233_v41 = vld [vmem:[#allocation2 + $0x50] sm:$0xff]  ;;  %v5239_v44 = vld [vmem:[#allocation2 + $0x61] sm:$0xff]  ;;  %367 = vst.msk [vmem:[#allocation2 + $0xb0] sm:$0xff] %vm336_vm1, %v360_v59 }
  0x4e   : > { %4301 = vmatmul.mubr.msk.f32.gmra.mrb[2].mxu0 %vm336_vm1, %v5195_v33  ;;  %4381 = vmatmul.mubr.msk.f32.gmra.mrb[2].mxu1 %vm336_vm1, %v5197_v34  ;;  %v5235_v42 = vld [vmem:[#allocation2 + $0x51] sm:$0xff]  ;;  %v5237_v43 = vld [vmem:[#allocation2 + $0x60] sm:$0xff]  ;;  %v5249_v45 = vld [vmem:[#allocation2 + $0x68] sm:$0xff] }
  0x4f   : > { %4303 = vmatprep.mubr.msk.f32.mxu0 %vm336_vm1, %v5203_v35  ;;  %4383 = vmatprep.mubr.msk.f32.mxu1 %vm336_vm1, %v5205_v36  ;;  %v5251_v46 = vld [vmem:[#allocation2 + $0x69] sm:$0xff]  ;;  %v5253_v47 = vld [vmem:[#allocation2 + $0x78] sm:$0xff]  ;;  %v5265_v49 = vld [vmem:[#allocation2 + $0x80] sm:$0xff] }
  0x50   : > { %v5255_v48 = vld [vmem:[#allocation2 + $0x79] sm:$0xff]  ;;  %v5267_v50 = vld [vmem:[#allocation2 + $0x81] sm:$0xff]  ;;  %v1342_v52 = vld [vmem:[#allocation2 + $0xa] sm:$0xff] }
  0x51   : > { %v1341_v51 = vld [vmem:[#allocation2 + $0x2] sm:$0xff]  ;;  %v5275_v53 = vld [vmem:[#allocation2 + $0x1a] sm:$0xff]  ;;  %v5293_v57 = vld [vmem:[#allocation2 + $0x32] sm:$0xff] }
  0x52   : > { %4304 = vmatmul.mubr.msk.f32.gmra.mrb[4].mxu0 %vm336_vm1, %v5217_v37  ;;  %4384 = vmatmul.mubr.msk.f32.gmra.mrb[4].mxu1 %vm336_vm1, %v5219_v38  ;;  %v5287_v56 = vld [vmem:[#allocation2 + $0x22] sm:$0xff]  ;;  %v359_v58 = vld [vmem:[%s5169_s11 + $0x18] sm:$0xff]  ;;  %v5313_v62 = vld [vmem:[#allocation2 + $0x4a] sm:$0xff] }
  0x53   : > { %4306 = vmatprep.mubr.msk.f32.mxu0 %vm336_vm1, %v5221_v39  ;;  %4386 = vmatprep.mubr.msk.f32.mxu1 %vm336_vm1, %v5223_v40  ;;  %366 = vst.msk [vmem:[#allocation2 + $0xa8] sm:$0xff] %vm336_vm1, %v359_v58  ;;  %v361_v60 = vld [vmem:[%s5169_s11 + $0x28] sm:$0x3]  ;;  %v5311_v61 = vld [vmem:[#allocation2 + $0x3a] sm:$0xff]  ;;  %v5323_v63 = vld [vmem:[#allocation2 + $0x52] sm:$0xff]  ;;  %s5858_s11 = scalar_lea.vmem (%p5976_p11), %s5966_s4, %s4083_s17 }
  0x54   : > { %368 = vst.msk [vmem:[#allocation2 + $0xb8] sm:$0x3] %vm339_vm2, %v361_v60  ;;  %v5325_v0 = vld [vmem:[#allocation2 + $0x62] sm:$0xff]  ;;  %v5335_v1 = vld [vmem:[#allocation2 + $0x6a] sm:$0xff]  ;;  %v5337_v2 = vld [vmem:[#allocation2 + $0x7a] sm:$0xff] }
  0x55   : > { %v5347_v3 = vld [vmem:[#allocation2 + $0x82] sm:$0xff]  ;;  %v4012_v5 = vld [vmem:[%s5964_s2 + $0x30] sm:$0xf]  ;;  %v5411_v8 = vld [vmem:[#allocation2 + $0x98] sm:$0xff] }
  0x56   : > { %4307 = vmatmul.mubr.msk.f32.gmra.mrb[6].mxu0 %vm336_vm1, %v5233_v41  ;;  %4387 = vmatmul.mubr.msk.f32.gmra.mrb[6].mxu1 %vm336_vm1, %v5235_v42  ;;  %v3944_v4 = vld [vmem:[%s5964_s2 + $0x20] sm:$0xf]  ;;  %v5399_v6 = vld [vmem:[#allocation2 + $0x90] sm:$0xff]  ;;  %v3958_v10 = vld [vmem:[%s5964_s2 + $0x24] sm:$0xf] }
  0x57   : > { %4309 = vmatprep.mubr.msk.f32.mxu0 %vm336_vm1, %v5237_v43  ;;  %4389 = vmatprep.mubr.msk.f32.mxu1 %vm336_vm1, %v5239_v44  ;;  %v5401_v7 = vld [vmem:[#allocation2 + $0x91] sm:$0xff]  ;;  %v5413_v9 = vld [vmem:[#allocation2 + $0x99] sm:$0xff]  ;;  %v3972_v14 = vld [vmem:[%s5964_s2 + $0x28] sm:$0xf] }
  0x58   : > { %v4026_v11 = vld [vmem:[%s5964_s2 + $0x34] sm:$0xf]  ;;  %v5475_v13 = vld [vmem:[#allocation2 + $0x9a] sm:$0xff]  ;;  %v3986_v16 = vld [vmem:[%s5964_s2 + $0x2c] sm:$0xf] }
  0x59   : > { %v5465_v12 = vld [vmem:[#allocation2 + $0x92] sm:$0xff]  ;;  %v4054_v17 = vld [vmem:[%s5964_s2 + $0x3c] sm:$0xf]  ;;  %v5688_v24 = vld [vmem:[#allocation3] ss:$0 sm:$0xff] }
  0x5a   : > { %4310 = vmatmul.mubr.msk.f32.gmra.mrb[8].mxu0 %vm336_vm1, %v5249_v45  ;;  %4390 = vmatmul.mubr.msk.f32.gmra.mrb[8].mxu1 %vm336_vm1, %v5251_v46  ;;  %v4040_v15 = vld [vmem:[%s5964_s2 + $0x38] sm:$0xf]  ;;  %v2315_v18 = vld [vmem:[#allocation2 + $0xa8] sm:$0xff]  ;;  %v2316_v20 = vld [vmem:[#allocation2 + $0xb0] sm:$0xff] }
  0x5b   : > { %4312 = vmatprep.mubr.msk.f32.mxu0 %vm336_vm1, %v5253_v47  ;;  %4392 = vmatprep.mubr.msk.f32.mxu1 %vm336_vm1, %v5255_v48  ;;  %v3088_v19 = vld [vmem:[#allocation2 + $0xa9] sm:$0xff]  ;;  %v3089_v21 = vld [vmem:[#allocation2 + $0xb1] sm:$0xff] }
  0x5c   : > { %v3278_v22 = vld [vmem:[#allocation2 + $0xaa] sm:$0xff]  ;;  %v3279_v23 = vld [vmem:[#allocation2 + $0xb2] sm:$0xff] }
  0x5e   : > { %4313 = vmatmul.mubr.msk.f32.gmra.mrb[10].mxu0 %vm336_vm1, %v5265_v49  ;;  %4393 = vmatmul.mubr.msk.f32.gmra.mrb[10].mxu1 %vm336_vm1, %v5267_v50 }
  0x5f   : > { %4317 = vmatprep.mubr.msk.f32.mxu0 %vm336_vm1, %v1151_v26  ;;  %4397 = vmatprep.mubr.msk.f32.mxu1 %vm336_vm1, %v1341_v51 }
  0x62   : > { %4318 = vmatmul.mubr.msk.f32.vlgmr.msra.gmra.mrb[0].mxu0 %vm336_vm1, %v1152_v28  ;;  %4398 = vmatmul.mubr.msk.f32.vlgmr.msra.gmra.mrb[0].mxu1 %vm336_vm1, %v1342_v52 }
  0x63   : > { %4336 = vmatpush3.msk.msra.mxu0 %vm425_vm0, %v3848_v31  ;;  %4416 = vmatpush3.msk.msra.mxu1 %vm425_vm0, %v3904_v32 }
  0x64   : > { %4320 = vmatprep.mubr.msk.f32.mxu0 %vm336_vm1, %v5181_v30  ;;  %4400 = vmatprep.mubr.msk.f32.mxu1 %vm336_vm1, %v5275_v53 }
  0x65   : > { %4355 = vmatprep.subr.msk.mxu0 %vm425_vm0, %v3862_v54  ;;  %4435 = vmatprep.subr.msk.mxu1 %vm425_vm0, %v3918_v55 }
  0x66   : > { %4321 = vmatmul.mubr.msk.f32.gmra.mrb[2].mxu0 %vm336_vm1, %v5197_v34  ;;  %4401 = vmatmul.mubr.msk.f32.gmra.mrb[2].mxu1 %vm336_vm1, %v5287_v56 }
  0x67   : > { %4323 = vmatprep.mubr.msk.f32.mxu0 %vm336_vm1, %v5205_v36  ;;  %4403 = vmatprep.mubr.msk.f32.mxu1 %vm336_vm1, %v5293_v57 }
  0x6a   : > { %4324 = vmatmul.mubr.msk.f32.gmra.mrb[4].mxu0 %vm336_vm1, %v5219_v38  ;;  %4404 = vmatmul.mubr.msk.f32.gmra.mrb[4].mxu1 %vm336_vm1, %v5311_v61 }
  0x6b   : > { %4326 = vmatprep.mubr.msk.f32.mxu0 %vm336_vm1, %v5223_v40  ;;  %4406 = vmatprep.mubr.msk.f32.mxu1 %vm336_vm1, %v5313_v62 }
  0x6e   : > { %4327 = vmatmul.mubr.msk.f32.gmra.mrb[6].mxu0 %vm336_vm1, %v5235_v42  ;;  %4407 = vmatmul.mubr.msk.f32.gmra.mrb[6].mxu1 %vm336_vm1, %v5323_v63 }
  0x6f   : > { %4329 = vmatprep.mubr.msk.f32.mxu0 %vm336_vm1, %v5239_v44  ;;  %4409 = vmatprep.mubr.msk.f32.mxu1 %vm336_vm1, %v5325_v0 }
  0x72   : > { %4330 = vmatmul.mubr.msk.f32.gmra.mrb[8].mxu0 %vm336_vm1, %v5251_v46  ;;  %4410 = vmatmul.mubr.msk.f32.gmra.mrb[8].mxu1 %vm336_vm1, %v5335_v1 }
  0x73   : > { %4332 = vmatprep.mubr.msk.f32.mxu0 %vm336_vm1, %v5255_v48  ;;  %4412 = vmatprep.mubr.msk.f32.mxu1 %vm336_vm1, %v5337_v2 }
  0x76   : > { %4333 = vmatmul.mubr.msk.f32.gmra.mrb[10].mxu0 %vm336_vm1, %v5267_v50  ;;  %4413 = vmatmul.mubr.msk.f32.gmra.mrb[10].mxu1 %vm336_vm1, %v5347_v3 }
  0x77   : > { %4337 = vmatprep.mubr.msk.f32.mxu0 %vm336_vm1, %v5179_v29  ;;  %4417 = vmatprep.mubr.msk.f32.mxu1 %vm336_vm1, %v5181_v30 }
  0x7a   : > { %4338 = vmatmul.mubr.msk.f32.vlgmr.msra.gmra.mrb[0].mxu0 %vm336_vm1, %v5195_v33  ;;  %4418 = vmatmul.mubr.msk.f32.vlgmr.msra.gmra.mrb[0].mxu1 %vm336_vm1, %v5197_v34 }
  0x7b   : > { %4356 = vmatpush3.msk.msra.mxu0 %vm425_vm0, %v3862_v54  ;;  %4436 = vmatpush3.msk.msra.mxu1 %vm425_vm0, %v3918_v55 }
  0x7c   : > { %4340 = vmatprep.mubr.msk.f32.mxu0 %vm336_vm1, %v5203_v35  ;;  %4420 = vmatprep.mubr.msk.f32.mxu1 %vm336_vm1, %v5205_v36 }
  0x7d   : > { %4455 = vmatprep.subr.msk.mxu0 %vm425_vm0, %v3944_v4  ;;  %4535 = vmatprep.subr.msk.mxu1 %vm425_vm0, %v4012_v5 }
  0x7e   : > { %4341 = vmatmul.mubr.msk.f32.gmra.mrb[2].mxu0 %vm336_vm1, %v5217_v37  ;;  %4421 = vmatmul.mubr.msk.f32.gmra.mrb[2].mxu1 %vm336_vm1, %v5219_v38 }
  0x7f   : > { %4343 = vmatprep.mubr.msk.f32.mxu0 %vm336_vm1, %v5221_v39  ;;  %4423 = vmatprep.mubr.msk.f32.mxu1 %vm336_vm1, %v5223_v40 }
  0x82   : > { %4344 = vmatmul.mubr.msk.f32.gmra.mrb[4].mxu0 %vm336_vm1, %v5233_v41  ;;  %4424 = vmatmul.mubr.msk.f32.gmra.mrb[4].mxu1 %vm336_vm1, %v5235_v42 }
  0x83   : > { %4346 = vmatprep.mubr.msk.f32.mxu0 %vm336_vm1, %v5237_v43  ;;  %4426 = vmatprep.mubr.msk.f32.mxu1 %vm336_vm1, %v5239_v44 }
  0x86   : > { %4347 = vmatmul.mubr.msk.f32.gmra.mrb[6].mxu0 %vm336_vm1, %v5249_v45  ;;  %4427 = vmatmul.mubr.msk.f32.gmra.mrb[6].mxu1 %vm336_vm1, %v5251_v46 }
  0x87   : > { %4349 = vmatprep.mubr.msk.f32.mxu0 %vm336_vm1, %v5253_v47  ;;  %4429 = vmatprep.mubr.msk.f32.mxu1 %vm336_vm1, %v5255_v48 }
  0x8a   : > { %4350 = vmatmul.mubr.msk.f32.gmra.mrb[8].mxu0 %vm336_vm1, %v5265_v49  ;;  %4430 = vmatmul.mubr.msk.f32.gmra.mrb[8].mxu1 %vm336_vm1, %v5267_v50 }
  0x8b   : > { %4352 = vmatprep.mubr.msk.f32.mxu0 %vm336_vm1, %v5399_v6  ;;  %4432 = vmatprep.mubr.msk.f32.mxu1 %vm336_vm1, %v5401_v7 }
  0x8e   : > { %4353 = vmatmul.mubr.msk.f32.gmra.mrb[10].mxu0 %vm336_vm1, %v5411_v8  ;;  %4433 = vmatmul.mubr.msk.f32.gmra.mrb[10].mxu1 %vm336_vm1, %v5413_v9 }
  0x8f   : > { %4357 = vmatprep.mubr.msk.f32.mxu0 %vm336_vm1, %v5181_v30  ;;  %4437 = vmatprep.mubr.msk.f32.mxu1 %vm336_vm1, %v5275_v53 }
  0x92   : > { %4358 = vmatmul.mubr.msk.f32.vlgmr.msra.gmra.mrb[0].mxu0 %vm336_vm1, %v5197_v34  ;;  %4438 = vmatmul.mubr.msk.f32.vlgmr.msra.gmra.mrb[0].mxu1 %vm336_vm1, %v5287_v56 }
  0x93   : > { %4456 = vmatpush3.msk.msra.mxu0 %vm425_vm0, %v3944_v4  ;;  %4536 = vmatpush3.msk.msra.mxu1 %vm425_vm0, %v4012_v5 }
  0x94   : > { %4360 = vmatprep.mubr.msk.f32.mxu0 %vm336_vm1, %v5205_v36  ;;  %4440 = vmatprep.mubr.msk.f32.mxu1 %vm336_vm1, %v5293_v57 }
  0x95   : > { %4475 = vmatprep.subr.msk.mxu0 %vm425_vm0, %v3958_v10  ;;  %4555 = vmatprep.subr.msk.mxu1 %vm425_vm0, %v4026_v11 }
  0x96   : > { %4361 = vmatmul.mubr.msk.f32.gmra.mrb[2].mxu0 %vm336_vm1, %v5219_v38  ;;  %4441 = vmatmul.mubr.msk.f32.gmra.mrb[2].mxu1 %vm336_vm1, %v5311_v61 }
  0x97   : > { %4363 = vmatprep.mubr.msk.f32.mxu0 %vm336_vm1, %v5223_v40  ;;  %4443 = vmatprep.mubr.msk.f32.mxu1 %vm336_vm1, %v5313_v62 }
  0x9a   : > { %4364 = vmatmul.mubr.msk.f32.gmra.mrb[4].mxu0 %vm336_vm1, %v5235_v42  ;;  %4444 = vmatmul.mubr.msk.f32.gmra.mrb[4].mxu1 %vm336_vm1, %v5323_v63 }
  0x9b   : > { %4366 = vmatprep.mubr.msk.f32.mxu0 %vm336_vm1, %v5239_v44  ;;  %4446 = vmatprep.mubr.msk.f32.mxu1 %vm336_vm1, %v5325_v0 }
  0x9e   : > { %4367 = vmatmul.mubr.msk.f32.gmra.mrb[6].mxu0 %vm336_vm1, %v5251_v46  ;;  %4447 = vmatmul.mubr.msk.f32.gmra.mrb[6].mxu1 %vm336_vm1, %v5335_v1 }
  0x9f   : > { %4369 = vmatprep.mubr.msk.f32.mxu0 %vm336_vm1, %v5255_v48  ;;  %4449 = vmatprep.mubr.msk.f32.mxu1 %vm336_vm1, %v5337_v2 }
  0xa2   : > { %4370 = vmatmul.mubr.msk.f32.gmra.mrb[8].mxu0 %vm336_vm1, %v5267_v50  ;;  %4450 = vmatmul.mubr.msk.f32.gmra.mrb[8].mxu1 %vm336_vm1, %v5347_v3 }
  0xa3   : > { %4372 = vmatprep.mubr.msk.f32.mxu0 %vm336_vm1, %v5401_v7  ;;  %4452 = vmatprep.mubr.msk.f32.mxu1 %vm336_vm1, %v5465_v12 }
  0xa6   : > { %4373 = vmatmul.mubr.msk.f32.gmra.mrb[10].mxu0 %vm336_vm1, %v5413_v9  ;;  %4453 = vmatmul.mubr.msk.f32.gmra.mrb[10].mxu1 %vm336_vm1, %v5475_v13 }
  0xa7   : > { %4457 = vmatprep.mubr.msk.f32.mxu0 %vm336_vm1, %v5179_v29  ;;  %4537 = vmatprep.mubr.msk.f32.mxu1 %vm336_vm1, %v5181_v30 }
  0xaa   : > { %4458 = vmatmul.mubr.msk.f32.vlgmr.msra.gmra.mrb[12].mxu0 %vm336_vm1, %v5195_v33  ;;  %4538 = vmatmul.mubr.msk.f32.vlgmr.msra.gmra.mrb[12].mxu1 %vm336_vm1, %v5197_v34 }
  0xab   : > { %4476 = vmatpush3.msk.msra.mxu0 %vm425_vm0, %v3958_v10  ;;  %4556 = vmatpush3.msk.msra.mxu1 %vm425_vm0, %v4026_v11 }
  0xac   : > { %4460 = vmatprep.mubr.msk.f32.mxu0 %vm336_vm1, %v5203_v35  ;;  %4540 = vmatprep.mubr.msk.f32.mxu1 %vm336_vm1, %v5205_v36 }
  0xad   : > { %4495 = vmatprep.subr.msk.mxu0 %vm425_vm0, %v3972_v14  ;;  %4575 = vmatprep.subr.msk.mxu1 %vm425_vm0, %v4040_v15 }
  0xae   : > { %4461 = vmatmul.mubr.msk.f32.gmra.mrb[14].mxu0 %vm336_vm1, %v5217_v37  ;;  %4541 = vmatmul.mubr.msk.f32.gmra.mrb[14].mxu1 %vm336_vm1, %v5219_v38 }
  0xaf   : > { %4463 = vmatprep.mubr.msk.f32.mxu0 %vm336_vm1, %v5221_v39  ;;  %4543 = vmatprep.mubr.msk.f32.mxu1 %vm336_vm1, %v5223_v40 }
  0xb2   : > { %4464 = vmatmul.mubr.msk.f32.gmra.mrb[16].mxu0 %vm336_vm1, %v5233_v41  ;;  %4544 = vmatmul.mubr.msk.f32.gmra.mrb[16].mxu1 %vm336_vm1, %v5235_v42 }
  0xb3   : > { %4466 = vmatprep.mubr.msk.f32.mxu0 %vm336_vm1, %v5237_v43  ;;  %4546 = vmatprep.mubr.msk.f32.mxu1 %vm336_vm1, %v5239_v44 }
  0xb6   : > { %4467 = vmatmul.mubr.msk.f32.gmra.mrb[18].mxu0 %vm336_vm1, %v5249_v45  ;;  %4547 = vmatmul.mubr.msk.f32.gmra.mrb[18].mxu1 %vm336_vm1, %v5251_v46 }
  0xb7   : > { %4469 = vmatprep.mubr.msk.f32.mxu0 %vm336_vm1, %v5253_v47  ;;  %4549 = vmatprep.mubr.msk.f32.mxu1 %vm336_vm1, %v5255_v48 }
  0xba   : > { %4470 = vmatmul.mubr.msk.f32.gmra.mrb[20].mxu0 %vm336_vm1, %v5265_v49  ;;  %4550 = vmatmul.mubr.msk.f32.gmra.mrb[20].mxu1 %vm336_vm1, %v5267_v50 }
  0xbb   : > { %4472 = vmatprep.mubr.msk.f32.mxu0 %vm336_vm1, %v5399_v6  ;;  %4552 = vmatprep.mubr.msk.f32.mxu1 %vm336_vm1, %v5401_v7 }
  0xbe   : > { %4473 = vmatmul.mubr.msk.f32.gmra.mrb[22].mxu0 %vm336_vm1, %v5411_v8  ;;  %4553 = vmatmul.mubr.msk.f32.gmra.mrb[22].mxu1 %vm336_vm1, %v5413_v9 }
  0xbf   : > { %4477 = vmatprep.mubr.msk.f32.mxu0 %vm336_vm1, %v5181_v30  ;;  %4557 = vmatprep.mubr.msk.f32.mxu1 %vm336_vm1, %v5275_v53 }
  0xc2   : > { %4478 = vmatmul.mubr.msk.f32.vlgmr.msra.gmra.mrb[12].mxu0 %vm336_vm1, %v5197_v34  ;;  %4558 = vmatmul.mubr.msk.f32.vlgmr.msra.gmra.mrb[12].mxu1 %vm336_vm1, %v5287_v56 }
  0xc3   : > { %4496 = vmatpush3.msk.msra.mxu0 %vm425_vm0, %v3972_v14  ;;  %4576 = vmatpush3.msk.msra.mxu1 %vm425_vm0, %v4040_v15 }
  0xc4   : > { %4480 = vmatprep.mubr.msk.f32.mxu0 %vm336_vm1, %v5205_v36  ;;  %4560 = vmatprep.mubr.msk.f32.mxu1 %vm336_vm1, %v5293_v57 }
  0xc5   : > { %4515 = vmatprep.subr.msk.mxu0 %vm425_vm0, %v3986_v16  ;;  %4595 = vmatprep.subr.msk.mxu1 %vm425_vm0, %v4054_v17 }
  0xc6   : > { %4481 = vmatmul.mubr.msk.f32.gmra.mrb[14].mxu0 %vm336_vm1, %v5219_v38  ;;  %4561 = vmatmul.mubr.msk.f32.gmra.mrb[14].mxu1 %vm336_vm1, %v5311_v61 }
  0xc7   : > { %4483 = vmatprep.mubr.msk.f32.mxu0 %vm336_vm1, %v5223_v40  ;;  %4563 = vmatprep.mubr.msk.f32.mxu1 %vm336_vm1, %v5313_v62 }
  0xca   : > { %4484 = vmatmul.mubr.msk.f32.gmra.mrb[16].mxu0 %vm336_vm1, %v5235_v42  ;;  %4564 = vmatmul.mubr.msk.f32.gmra.mrb[16].mxu1 %vm336_vm1, %v5323_v63 }
  0xcb   : > { %4486 = vmatprep.mubr.msk.f32.mxu0 %vm336_vm1, %v5239_v44  ;;  %4566 = vmatprep.mubr.msk.f32.mxu1 %vm336_vm1, %v5325_v0 }
  0xce   : > { %4487 = vmatmul.mubr.msk.f32.gmra.mrb[18].mxu0 %vm336_vm1, %v5251_v46  ;;  %4567 = vmatmul.mubr.msk.f32.gmra.mrb[18].mxu1 %vm336_vm1, %v5335_v1 }
  0xcf   : > { %4489 = vmatprep.mubr.msk.f32.mxu0 %vm336_vm1, %v5255_v48  ;;  %4569 = vmatprep.mubr.msk.f32.mxu1 %vm336_vm1, %v5337_v2 }
  0xd2   : > { %4490 = vmatmul.mubr.msk.f32.gmra.mrb[20].mxu0 %vm336_vm1, %v5267_v50  ;;  %4570 = vmatmul.mubr.msk.f32.gmra.mrb[20].mxu1 %vm336_vm1, %v5347_v3 }
  0xd3   : > { %4492 = vmatprep.mubr.msk.f32.mxu0 %vm336_vm1, %v5401_v7  ;;  %4572 = vmatprep.mubr.msk.f32.mxu1 %vm336_vm1, %v5465_v12 }
  0xd6   : > { %4493 = vmatmul.mubr.msk.f32.gmra.mrb[22].mxu0 %vm336_vm1, %v5413_v9  ;;  %4573 = vmatmul.mubr.msk.f32.gmra.mrb[22].mxu1 %vm336_vm1, %v5475_v13 }
  0xd7   : > { %4497 = vmatprep.mubr.msk.f32.mxu0 %vm336_vm1, %v5203_v35  ;;  %4577 = vmatprep.mubr.msk.f32.mxu1 %vm336_vm1, %v5205_v36 }
  0xda   : > { %4498 = vmatmul.mubr.msk.f32.vlgmr.msra.gmra.mrb[12].mxu0 %vm336_vm1, %v5217_v37  ;;  %4578 = vmatmul.mubr.msk.f32.vlgmr.msra.gmra.mrb[12].mxu1 %vm336_vm1, %v5219_v38 }
  0xdb   : > { %4516 = vmatpush3.msk.msra.mxu0 %vm425_vm0, %v3986_v16  ;;  %4596 = vmatpush3.msk.msra.mxu1 %vm425_vm0, %v4054_v17 }
  0xdc   : > { %4500 = vmatprep.mubr.msk.f32.mxu0 %vm336_vm1, %v5221_v39  ;;  %4580 = vmatprep.mubr.msk.f32.mxu1 %vm336_vm1, %v5223_v40 }
  0xde   : > { %4501 = vmatmul.mubr.msk.f32.gmra.mrb[14].mxu0 %vm336_vm1, %v5233_v41  ;;  %4581 = vmatmul.mubr.msk.f32.gmra.mrb[14].mxu1 %vm336_vm1, %v5235_v42 }
  0xdf   : > { %4503 = vmatprep.mubr.msk.f32.mxu0 %vm336_vm1, %v5237_v43  ;;  %4583 = vmatprep.mubr.msk.f32.mxu1 %vm336_vm1, %v5239_v44 }
  0xe2   : > { %4504 = vmatmul.mubr.msk.f32.gmra.mrb[16].mxu0 %vm336_vm1, %v5249_v45  ;;  %4584 = vmatmul.mubr.msk.f32.gmra.mrb[16].mxu1 %vm336_vm1, %v5251_v46 }
  0xe3   : > { %4506 = vmatprep.mubr.msk.f32.mxu0 %vm336_vm1, %v5253_v47  ;;  %4586 = vmatprep.mubr.msk.f32.mxu1 %vm336_vm1, %v5255_v48 }
  0xe6   : > { %4507 = vmatmul.mubr.msk.f32.gmra.mrb[18].mxu0 %vm336_vm1, %v5265_v49  ;;  %4587 = vmatmul.mubr.msk.f32.gmra.mrb[18].mxu1 %vm336_vm1, %v5267_v50 }
  0xe7   : > { %4509 = vmatprep.mubr.msk.f32.mxu0 %vm336_vm1, %v5399_v6  ;;  %4589 = vmatprep.mubr.msk.f32.mxu1 %vm336_vm1, %v5401_v7 }
  0xea   : > { %4510 = vmatmul.mubr.msk.f32.gmra.mrb[20].mxu0 %vm336_vm1, %v5411_v8  ;;  %4590 = vmatmul.mubr.msk.f32.gmra.mrb[20].mxu1 %vm336_vm1, %v5413_v9 }
  0xeb   : > { %4512 = vmatprep.mubr.msk.f32.mxu0 %vm336_vm1, %v2315_v18  ;;  %4592 = vmatprep.mubr.msk.f32.mxu1 %vm336_vm1, %v3088_v19 }
  0xee   : > { %4513 = vmatmul.mubr.msk.f32.gmra.mrb[22].mxu0 %vm336_vm1, %v2316_v20  ;;  %4593 = vmatmul.mubr.msk.f32.gmra.mrb[22].mxu1 %vm336_vm1, %v3089_v21 }
  0xef   : > { %4517 = vmatprep.mubr.msk.f32.mxu0 %vm336_vm1, %v5205_v36  ;;  %4597 = vmatprep.mubr.msk.f32.mxu1 %vm336_vm1, %v5293_v57 }
  0xf2   : > { %4518 = vmatmul.mubr.msk.f32.vlgmr.msra.gmra.mrb[12].mxu0 %vm336_vm1, %v5219_v38  ;;  %4598 = vmatmul.mubr.msk.f32.vlgmr.msra.gmra.mrb[12].mxu1 %vm336_vm1, %v5311_v61 }
  0xf3   : > { %4520 = vmatprep.mubr.msk.f32.mxu0 %vm336_vm1, %v5223_v40  ;;  %4600 = vmatprep.mubr.msk.f32.mxu1 %vm336_vm1, %v5313_v62 }
  0xf6   : > { %4521 = vmatmul.mubr.msk.f32.gmra.mrb[14].mxu0 %vm336_vm1, %v5235_v42  ;;  %4601 = vmatmul.mubr.msk.f32.gmra.mrb[14].mxu1 %vm336_vm1, %v5323_v63 }
  0xf7   : > { %4523 = vmatprep.mubr.msk.f32.mxu0 %vm336_vm1, %v5239_v44  ;;  %4603 = vmatprep.mubr.msk.f32.mxu1 %vm336_vm1, %v5325_v0 }
  0xfa   : > { %4524 = vmatmul.mubr.msk.f32.gmra.mrb[16].mxu0 %vm336_vm1, %v5251_v46  ;;  %4604 = vmatmul.mubr.msk.f32.gmra.mrb[16].mxu1 %vm336_vm1, %v5335_v1 }
  0xfb   : > { %4526 = vmatprep.mubr.msk.f32.mxu0 %vm336_vm1, %v5255_v48  ;;  %4606 = vmatprep.mubr.msk.f32.mxu1 %vm336_vm1, %v5337_v2 }
  0xfe   : > { %4527 = vmatmul.mubr.msk.f32.gmra.mrb[18].mxu0 %vm336_vm1, %v5267_v50  ;;  %4607 = vmatmul.mubr.msk.f32.gmra.mrb[18].mxu1 %vm336_vm1, %v5347_v3 }
  0xff   : > { %4529 = vmatprep.mubr.msk.f32.mxu0 %vm336_vm1, %v5401_v7  ;;  %4609 = vmatprep.mubr.msk.f32.mxu1 %vm336_vm1, %v5465_v12 }
 0x102   : > { %4530 = vmatmul.mubr.msk.f32.gmra.mrb[20].mxu0 %vm336_vm1, %v5413_v9  ;;  %4610 = vmatmul.mubr.msk.f32.gmra.mrb[20].mxu1 %vm336_vm1, %v5475_v13 }
 0x103   : > { %4532 = vmatprep.mubr.msk.f32.mxu0 %vm336_vm1, %v3088_v19  ;;  %4612 = vmatprep.mubr.msk.f32.mxu1 %vm336_vm1, %v3278_v22 }
 0x106   : > { %4533 = vmatmul.mubr.msk.f32.gmra.mrb[22].mxu0 %vm336_vm1, %v3089_v21  ;;  %4613 = vmatmul.mubr.msk.f32.gmra.mrb[22].mxu1 %vm336_vm1, %v3279_v23 }
 0x165   : > { %v4359_v25 = vpop.f32.mrb[0].mxu0  ;;  %v4439_v26 = vpop.f32.mrb[0].mxu1 }
 0x166   : > { %v4615_v27 = vadd.f32 %v4359_v25, %v5688_v24  ;;  %v4627_v28 = vadd.f32 %v4439_v26, %v5688_v24  ;;  %v1066_v29 = vpop.f32.mrb[1].mxu0  ;;  %v1838_v30 = vpop.f32.mrb[1].mxu1 }
 0x167   : > { %v4616_v31 = vadd.f32 %v5688_v24, %v1066_v29  ;;  %v4628_v32 = vadd.f32 %v5688_v24, %v1838_v30 }
 0x168   : > { %1138 = vst.msk [vmem:[%s5694_s14 + $0x8] sm:$0xff] %vm336_vm1, %v4615_v27  ;;  %3933 = vst.msk [vmem:[%s5694_s14 + $0x68] sm:$0xff] %vm336_vm1, %v4627_v28 }
 0x169   : > { %1137 = vst.msk [vmem:[%s5694_s14] sm:$0xff] %vm336_vm1, %v4616_v31  ;;  %3932 = vst.msk [vmem:[%s5694_s14 + $0x60] sm:$0xff] %vm336_vm1, %v4628_v32  ;;  %v4362_v33 = vpop.f32.mrb[2].mxu0  ;;  %v4442_v34 = vpop.f32.mrb[2].mxu1 }
 0x16a   : > { %v4617_v35 = vadd.f32 %v4362_v33, %v5688_v24  ;;  %v4629_v36 = vadd.f32 %v4442_v34, %v5688_v24  ;;  %v1076_v37 = vpop.f32.mrb[3].mxu0  ;;  %v1848_v38 = vpop.f32.mrb[3].mxu1 }
 0x16b   : > { %v4618_v39 = vadd.f32 %v5688_v24, %v1076_v37  ;;  %v4630_v40 = vadd.f32 %v5688_v24, %v1848_v38 }
 0x16c   : > { %1140 = vst.msk [vmem:[%s5694_s14 + $0x18] sm:$0xff] %vm336_vm1, %v4617_v35  ;;  %3935 = vst.msk [vmem:[%s5694_s14 + $0x78] sm:$0xff] %vm336_vm1, %v4629_v36 }
 0x16d   : > { %1139 = vst.msk [vmem:[%s5694_s14 + $0x10] sm:$0xff] %vm336_vm1, %v4618_v39  ;;  %3934 = vst.msk [vmem:[%s5694_s14 + $0x70] sm:$0xff] %vm336_vm1, %v4630_v40  ;;  %v4365_v41 = vpop.f32.mrb[4].mxu0  ;;  %v4445_v42 = vpop.f32.mrb[4].mxu1 }
 0x16e   : > { %v4619_v43 = vadd.f32 %v4365_v41, %v5688_v24  ;;  %v4631_v44 = vadd.f32 %v4445_v42, %v5688_v24  ;;  %v1086_v45 = vpop.f32.mrb[5].mxu0  ;;  %v1858_v46 = vpop.f32.mrb[5].mxu1 }
 0x16f   : > { %v4620_v47 = vadd.f32 %v5688_v24, %v1086_v45  ;;  %v4632_v48 = vadd.f32 %v5688_v24, %v1858_v46 }
 0x170   : > { %1142 = vst.msk [vmem:[%s5694_s14 + $0x28] sm:$0xff] %vm336_vm1, %v4619_v43  ;;  %3937 = vst.msk [vmem:[%s5694_s14 + $0x88] sm:$0xff] %vm336_vm1, %v4631_v44 }
 0x171   : > { %1141 = vst.msk [vmem:[%s5694_s14 + $0x20] sm:$0xff] %vm336_vm1, %v4620_v47  ;;  %3936 = vst.msk [vmem:[%s5694_s14 + $0x80] sm:$0xff] %vm336_vm1, %v4632_v48  ;;  %v4368_v49 = vpop.f32.mrb[6].mxu0  ;;  %v4448_v50 = vpop.f32.mrb[6].mxu1 }
 0x172   : > { %v4621_v51 = vadd.f32 %v4368_v49, %v5688_v24  ;;  %v4633_v52 = vadd.f32 %v4448_v50, %v5688_v24  ;;  %v1096_v53 = vpop.f32.mrb[7].mxu0  ;;  %v1868_v54 = vpop.f32.mrb[7].mxu1 }
 0x173   : > { %v4622_v55 = vadd.f32 %v5688_v24, %v1096_v53  ;;  %v4634_v56 = vadd.f32 %v5688_v24, %v1868_v54 }
 0x174   : > { %1144 = vst.msk [vmem:[%s5694_s14 + $0x38] sm:$0xff] %vm336_vm1, %v4621_v51  ;;  %3939 = vst.msk [vmem:[%s5694_s14 + $0x98] sm:$0xff] %vm336_vm1, %v4633_v52 }
 0x175   : > { %1143 = vst.msk [vmem:[%s5694_s14 + $0x30] sm:$0xff] %vm336_vm1, %v4622_v55  ;;  %3938 = vst.msk [vmem:[%s5694_s14 + $0x90] sm:$0xff] %vm336_vm1, %v4634_v56  ;;  %v4371_v57 = vpop.f32.mrb[8].mxu0  ;;  %v4451_v58 = vpop.f32.mrb[8].mxu1 }
 0x176   : > { %v4623_v59 = vadd.f32 %v4371_v57, %v5688_v24  ;;  %v4635_v60 = vadd.f32 %v4451_v58, %v5688_v24  ;;  %v1106_v61 = vpop.f32.mrb[9].mxu0  ;;  %v1878_v62 = vpop.f32.mrb[9].mxu1  ;;  %v3606_v58 = vld [vmem:[%s5694_s14 + $0x8] sm:$0xff] (%p5976_p11) }
 0x177   : > { %v4624_v63 = vadd.f32 %v5688_v24, %v1106_v61  ;;  %v4636_v0 = vadd.f32 %v5688_v24, %v1878_v62  ;;  %v3614_v62 = vld [vmem:[%s5694_s14 + $0x28] sm:$0xff] (%p5976_p11)  ;;  %3607 = vst [vmem:[%s5858_s11 + $0x8] sm:$0xff] (%p5976_p11), %v3606_v58 }
 0x178   : > { %1146 = vst.msk [vmem:[%s5694_s14 + $0x48] sm:$0xff] %vm336_vm1, %v4623_v59  ;;  %3941 = vst.msk [vmem:[%s5694_s14 + $0xa8] sm:$0xff] %vm336_vm1, %v4635_v60  ;;  %v3608_v59 = vld [vmem:[%s5694_s14 + $0x10] sm:$0xff] (%p5976_p11)  ;;  %v3610_v60 = vld [vmem:[%s5694_s14 + $0x18] sm:$0xff] (%p5976_p11) }
 0x179   : > { %1145 = vst.msk [vmem:[%s5694_s14 + $0x40] sm:$0xff] %vm336_vm1, %v4624_v63  ;;  %3940 = vst.msk [vmem:[%s5694_s14 + $0xa0] sm:$0xff] %vm336_vm1, %v4636_v0  ;;  %v4374_v1 = vpop.f32.mrb[10].mxu0  ;;  %v4454_v2 = vpop.f32.mrb[10].mxu1  ;;  %v3612_v61 = vld [vmem:[%s5694_s14 + $0x20] sm:$0xff] (%p5976_p11) }
 0x17a   : > { %v4625_v3 = vadd.f32 %v4374_v1, %v5688_v24  ;;  %v4637_v4 = vadd.f32 %v4454_v2, %v5688_v24  ;;  %v1116_v5 = vpop.f32.mrb[11].mxu0  ;;  %v1888_v6 = vpop.f32.mrb[11].mxu1  ;;  %3609 = vst [vmem:[%s5858_s11 + $0x10] sm:$0xff] (%p5976_p11), %v3608_v59  ;;  %3611 = vst [vmem:[%s5858_s11 + $0x18] sm:$0xff] (%p5976_p11), %v3610_v60 }
 0x17b   : > { %v4626_v7 = vadd.f32 %v5688_v24, %v1116_v5  ;;  %v4638_v8 = vadd.f32 %v5688_v24, %v1888_v6  ;;  %v3618_v0 = vld [vmem:[%s5694_s14 + $0x38] sm:$0xff] (%p5976_p11)  ;;  %v3628_v5 = vld [vmem:[%s5694_s14 + $0x60] sm:$0xff] (%p5976_p11)  ;;  %v3630_v6 = vld [vmem:[%s5694_s14 + $0x68] sm:$0xff] (%p5976_p11)  ;;  %3613 = vst [vmem:[%s5858_s11 + $0x20] sm:$0xff] (%p5976_p11), %v3612_v61 }
 0x17c   : > { %1148 = vst.msk [vmem:[%s5694_s14 + $0x58] sm:$0xff] %vm336_vm1, %v4625_v3  ;;  %3943 = vst.msk [vmem:[%s5694_s14 + $0xb8] sm:$0xff] %vm336_vm1, %v4637_v4  ;;  %v3616_v63 = vld [vmem:[%s5694_s14 + $0x30] sm:$0xff] (%p5976_p11) }
 0x17d   : > { %1147 = vst.msk [vmem:[%s5694_s14 + $0x50] sm:$0xff] %vm336_vm1, %v4626_v7  ;;  %3942 = vst.msk [vmem:[%s5694_s14 + $0xb0] sm:$0xff] %vm336_vm1, %v4638_v8  ;;  %v3632_v7 = vld [vmem:[%s5694_s14 + $0x70] sm:$0xff] (%p5976_p11)  ;;  %v3634_v8 = vld [vmem:[%s5694_s14 + $0x78] sm:$0xff] (%p5976_p11) }
 0x17e   : > { %3615 = vst [vmem:[%s5858_s11 + $0x28] sm:$0xff] (%p5976_p11), %v3614_v62  ;;  %3617 = vst [vmem:[%s5858_s11 + $0x30] sm:$0xff] (%p5976_p11), %v3616_v63 }
 0x17f   : > { %v3622_v2 = vld [vmem:[%s5694_s14 + $0x48] sm:$0xff] (%p5976_p11)  ;;  %3619 = vst [vmem:[%s5858_s11 + $0x38] sm:$0xff] (%p5976_p11), %v3618_v0  ;;  %3629 = vst [vmem:[%s5858_s11 + $0x120] sm:$0xff] (%p5976_p11), %v3628_v5 }
 0x180   : > { %v3620_v1 = vld [vmem:[%s5694_s14 + $0x40] sm:$0xff] (%p5976_p11)  ;;  %3623 = vst [vmem:[%s5858_s11 + $0x48] sm:$0xff] (%p5976_p11), %v3622_v2  ;;  %3631 = vst [vmem:[%s5858_s11 + $0x128] sm:$0xff] (%p5976_p11), %v3630_v6 }
 0x181   : > { %3621 = vst [vmem:[%s5858_s11 + $0x40] sm:$0xff] (%p5976_p11), %v3620_v1  ;;  %3633 = vst [vmem:[%s5858_s11 + $0x130] sm:$0xff] (%p5976_p11), %v3632_v7 }
 0x182   : > { %3635 = vst [vmem:[%s5858_s11 + $0x138] sm:$0xff] (%p5976_p11), %v3634_v8 }
 0x183   : > { %v3626_v4 = vld [vmem:[%s5694_s14 + $0x58] sm:$0xff] (%p5976_p11) }
 0x184   : > { %v3624_v3 = vld [vmem:[%s5694_s14 + $0x50] sm:$0xff] (%p5976_p11)  ;;  %3627 = vst [vmem:[%s5858_s11 + $0x58] sm:$0xff] (%p5976_p11), %v3626_v4 }
 0x185   : > { %3625 = vst [vmem:[%s5858_s11 + $0x50] sm:$0xff] (%p5976_p11), %v3624_v3 }
 0x1c5   : > { %v4519_v9 = vpop.f32.mrb[12].mxu0  ;;  %v4599_v10 = vpop.f32.mrb[12].mxu1 }
 0x1c6   : > { %v4639_v11 = vadd.f32 %v4519_v9, %v5688_v24  ;;  %v4651_v12 = vadd.f32 %v4599_v10, %v5688_v24  ;;  %v2612_v13 = vpop.f32.mrb[13].mxu0  ;;  %v3385_v14 = vpop.f32.mrb[13].mxu1  ;;  %v3636_v9 = vld [vmem:[%s5694_s14 + $0x80] sm:$0xff] (%p5976_p11)  ;;  %v3638_v10 = vld [vmem:[%s5694_s14 + $0x88] sm:$0xff] (%p5976_p11) }
 0x1c7   : > { %v4640_v15 = vadd.f32 %v5688_v24, %v2612_v13  ;;  %v4652_v16 = vadd.f32 %v5688_v24, %v3385_v14  ;;  %3637 = vst [vmem:[%s5858_s11 + $0x140] sm:$0xff] (%p5976_p11), %v3636_v9  ;;  %3639 = vst [vmem:[%s5858_s11 + $0x148] sm:$0xff] (%p5976_p11), %v3638_v10  ;;  %v3644_v13 = vld [vmem:[%s5694_s14 + $0xa0] sm:$0xff] (%p5976_p11)  ;;  %v3646_v14 = vld [vmem:[%s5694_s14 + $0xa8] sm:$0xff] (%p5976_p11) }
 0x1c8   : > { %4001 = vst.msk [vmem:[%s5694_s14 + $0xc8] sm:$0xff] %vm336_vm1, %v4639_v11  ;;  %4069 = vst.msk [vmem:[%s5694_s14 + $0x128] sm:$0xff] %vm336_vm1, %v4651_v12  ;;  %v3640_v11 = vld [vmem:[%s5694_s14 + $0x90] sm:$0xff] (%p5976_p11)  ;;  %v3642_v12 = vld [vmem:[%s5694_s14 + $0x98] sm:$0xff] (%p5976_p11) }
 0x1c9   : > { %4000 = vst.msk [vmem:[%s5694_s14 + $0xc0] sm:$0xff] %vm336_vm1, %v4640_v15  ;;  %4068 = vst.msk [vmem:[%s5694_s14 + $0x120] sm:$0xff] %vm336_vm1, %v4652_v16  ;;  %v4522_v17 = vpop.f32.mrb[14].mxu0  ;;  %v4602_v18 = vpop.f32.mrb[14].mxu1  ;;  %v3648_v15 = vld [vmem:[%s5694_s14 + $0xb0] sm:$0xff] (%p5976_p11)  ;;  %v3650_v16 = vld [vmem:[%s5694_s14 + $0xb8] sm:$0xff] (%p5976_p11) }
 0x1ca   : > { %v4641_v19 = vadd.f32 %v4522_v17, %v5688_v24  ;;  %v4653_v20 = vadd.f32 %v4602_v18, %v5688_v24  ;;  %v2622_v21 = vpop.f32.mrb[15].mxu0  ;;  %v3395_v22 = vpop.f32.mrb[15].mxu1  ;;  %3641 = vst [vmem:[%s5858_s11 + $0x150] sm:$0xff] (%p5976_p11), %v3640_v11  ;;  %3643 = vst [vmem:[%s5858_s11 + $0x158] sm:$0xff] (%p5976_p11), %v3642_v12 }
 0x1cb   : > { %v4642_v23 = vadd.f32 %v5688_v24, %v2622_v21  ;;  %v4654_v25 = vadd.f32 %v5688_v24, %v3395_v22  ;;  %3645 = vst [vmem:[%s5858_s11 + $0x160] sm:$0xff] (%p5976_p11), %v3644_v13  ;;  %3647 = vst [vmem:[%s5858_s11 + $0x168] sm:$0xff] (%p5976_p11), %v3646_v14 }
 0x1cc   : > { %4003 = vst.msk [vmem:[%s5694_s14 + $0xd8] sm:$0xff] %vm336_vm1, %v4641_v19  ;;  %4071 = vst.msk [vmem:[%s5694_s14 + $0x138] sm:$0xff] %vm336_vm1, %v4653_v20 }
 0x1cd   : > { %4002 = vst.msk [vmem:[%s5694_s14 + $0xd0] sm:$0xff] %vm336_vm1, %v4642_v23  ;;  %4070 = vst.msk [vmem:[%s5694_s14 + $0x130] sm:$0xff] %vm336_vm1, %v4654_v25  ;;  %v4525_v26 = vpop.f32.mrb[16].mxu0  ;;  %v4605_v27 = vpop.f32.mrb[16].mxu1 }
 0x1ce   : > { %v4643_v28 = vadd.f32 %v4525_v26, %v5688_v24  ;;  %v4655_v29 = vadd.f32 %v4605_v27, %v5688_v24  ;;  %v2632_v30 = vpop.f32.mrb[17].mxu0  ;;  %v3405_v31 = vpop.f32.mrb[17].mxu1  ;;  %3649 = vst [vmem:[%s5858_s11 + $0x170] sm:$0xff] (%p5976_p11), %v3648_v15  ;;  %3651 = vst [vmem:[%s5858_s11 + $0x178] sm:$0xff] (%p5976_p11), %v3650_v16 }
 0x1cf   : > { %v4644_v32 = vadd.f32 %v5688_v24, %v2632_v30  ;;  %v4656_v33 = vadd.f32 %v5688_v24, %v3405_v31  ;;  %v3654_v18 = vld [vmem:[%s5694_s14 + $0xc8] sm:$0xff] (%p5976_p11) }
 0x1d0   : > { %4005 = vst.msk [vmem:[%s5694_s14 + $0xe8] sm:$0xff] %vm336_vm1, %v4643_v28  ;;  %4073 = vst.msk [vmem:[%s5694_s14 + $0x148] sm:$0xff] %vm336_vm1, %v4655_v29  ;;  %v3652_v17 = vld [vmem:[%s5694_s14 + $0xc0] sm:$0xff] (%p5976_p11)  ;;  %v3678_v31 = vld [vmem:[%s5694_s14 + $0x128] sm:$0xff] (%p5976_p11) }
 0x1d1   : > { %4004 = vst.msk [vmem:[%s5694_s14 + $0xe0] sm:$0xff] %vm336_vm1, %v4644_v32  ;;  %4072 = vst.msk [vmem:[%s5694_s14 + $0x140] sm:$0xff] %vm336_vm1, %v4656_v33  ;;  %v4528_v34 = vpop.f32.mrb[18].mxu0  ;;  %v4608_v35 = vpop.f32.mrb[18].mxu1  ;;  %v3676_v30 = vld [vmem:[%s5694_s14 + $0x120] sm:$0xff] (%p5976_p11) }
 0x1d2   : > { %v4645_v36 = vadd.f32 %v4528_v34, %v5688_v24  ;;  %v4657_v37 = vadd.f32 %v4608_v35, %v5688_v24  ;;  %v2642_v38 = vpop.f32.mrb[19].mxu0  ;;  %v3415_v39 = vpop.f32.mrb[19].mxu1  ;;  %3653 = vst [vmem:[%s5858_s11 + $0x240] sm:$0xff] (%p5976_p11), %v3652_v17  ;;  %3655 = vst [vmem:[%s5858_s11 + $0x248] sm:$0xff] (%p5976_p11), %v3654_v18 }
 0x1d3   : > { %v4646_v40 = vadd.f32 %v5688_v24, %v2642_v38  ;;  %v4658_v41 = vadd.f32 %v5688_v24, %v3415_v39  ;;  %v3658_v20 = vld [vmem:[%s5694_s14 + $0xd8] sm:$0xff] (%p5976_p11)  ;;  %3677 = vst [vmem:[%s5858_s11 + $0x360] sm:$0xff] (%p5976_p11), %v3676_v30  ;;  %3679 = vst [vmem:[%s5858_s11 + $0x368] sm:$0xff] (%p5976_p11), %v3678_v31 }
 0x1d4   : > { %4007 = vst.msk [vmem:[%s5694_s14 + $0xf8] sm:$0xff] %vm336_vm1, %v4645_v36  ;;  %4075 = vst.msk [vmem:[%s5694_s14 + $0x158] sm:$0xff] %vm336_vm1, %v4657_v37  ;;  %v3656_v19 = vld [vmem:[%s5694_s14 + $0xd0] sm:$0xff] (%p5976_p11)  ;;  %v3682_v33 = vld [vmem:[%s5694_s14 + $0x138] sm:$0xff] (%p5976_p11) }
 0x1d5   : > { %4006 = vst.msk [vmem:[%s5694_s14 + $0xf0] sm:$0xff] %vm336_vm1, %v4646_v40  ;;  %4074 = vst.msk [vmem:[%s5694_s14 + $0x150] sm:$0xff] %vm336_vm1, %v4658_v41  ;;  %v4531_v42 = vpop.f32.mrb[20].mxu0  ;;  %v4611_v43 = vpop.f32.mrb[20].mxu1  ;;  %v3680_v32 = vld [vmem:[%s5694_s14 + $0x130] sm:$0xff] (%p5976_p11) }
 0x1d6   : > { %v4647_v44 = vadd.f32 %v4531_v42, %v5688_v24  ;;  %v4659_v45 = vadd.f32 %v4611_v43, %v5688_v24  ;;  %v2652_v46 = vpop.f32.mrb[21].mxu0  ;;  %v3425_v47 = vpop.f32.mrb[21].mxu1  ;;  %3657 = vst [vmem:[%s5858_s11 + $0x250] sm:$0xff] (%p5976_p11), %v3656_v19  ;;  %3659 = vst [vmem:[%s5858_s11 + $0x258] sm:$0xff] (%p5976_p11), %v3658_v20 }
 0x1d7   : > { %v4648_v48 = vadd.f32 %v5688_v24, %v2652_v46  ;;  %v4660_v49 = vadd.f32 %v5688_v24, %v3425_v47  ;;  %3475 = sbr.rel (!%p5976_p11) target bundleno = 487 (0x1e7), region = 44  ;;  %v3662_v22 = vld [vmem:[%s5694_s14 + $0xe8] sm:$0xff] (%p5976_p11)  ;;  %3681 = vst [vmem:[%s5858_s11 + $0x370] sm:$0xff] (%p5976_p11), %v3680_v32  ;;  %3683 = vst [vmem:[%s5858_s11 + $0x378] sm:$0xff] (%p5976_p11), %v3682_v33 }
 0x1d8   : > { %4009 = vst.msk [vmem:[%s5694_s14 + $0x108] sm:$0xff] %vm336_vm1, %v4647_v44  ;;  %4077 = vst.msk [vmem:[%s5694_s14 + $0x168] sm:$0xff] %vm336_vm1, %v4659_v45  ;;  %v3660_v21 = vld [vmem:[%s5694_s14 + $0xe0] sm:$0xff] (%p5976_p11)  ;;  %v3686_v35 = vld [vmem:[%s5694_s14 + $0x148] sm:$0xff] (%p5976_p11) }
 0x1d9   : > { %4008 = vst.msk [vmem:[%s5694_s14 + $0x100] sm:$0xff] %vm336_vm1, %v4648_v48  ;;  %4076 = vst.msk [vmem:[%s5694_s14 + $0x160] sm:$0xff] %vm336_vm1, %v4660_v49  ;;  %v4534_v50 = vpop.f32.mrb[22].mxu0  ;;  %v4614_v51 = vpop.f32.mrb[22].mxu1  ;;  %v3684_v34 = vld [vmem:[%s5694_s14 + $0x140] sm:$0xff] (%p5976_p11) }
 0x1da   : > { %v4649_v52 = vadd.f32 %v4534_v50, %v5688_v24  ;;  %v4661_v53 = vadd.f32 %v4614_v51, %v5688_v24  ;;  %v2662_v54 = vpop.f32.mrb[23].mxu0  ;;  %v3435_v55 = vpop.f32.mrb[23].mxu1  ;;  %3661 = vst [vmem:[%s5858_s11 + $0x260] sm:$0xff] (%p5976_p11), %v3660_v21  ;;  %3663 = vst [vmem:[%s5858_s11 + $0x268] sm:$0xff] (%p5976_p11), %v3662_v22 }
 0x1db   : > { %v4650_v56 = vadd.f32 %v5688_v24, %v2662_v54  ;;  %v4662_v57 = vadd.f32 %v5688_v24, %v3435_v55  ;;  %v3604_v24 = vld [vmem:[%s5694_s14] sm:$0xff] (%p5976_p11)  ;;  %v3666_v25 = vld [vmem:[%s5694_s14 + $0xf8] sm:$0xff] (%p5976_p11)  ;;  %3685 = vst [vmem:[%s5858_s11 + $0x380] sm:$0xff] (%p5976_p11), %v3684_v34  ;;  %3687 = vst [vmem:[%s5858_s11 + $0x388] sm:$0xff] (%p5976_p11), %v3686_v35 }
 0x1dc   : > { %4011 = vst.msk [vmem:[%s5694_s14 + $0x118] sm:$0xff] %vm336_vm1, %v4649_v52  ;;  %4079 = vst.msk [vmem:[%s5694_s14 + $0x178] sm:$0xff] %vm336_vm1, %v4661_v53  ;;  %v3664_v23 = vld [vmem:[%s5694_s14 + $0xf0] sm:$0xff] (%p5976_p11)  ;;  %v3690_v37 = vld [vmem:[%s5694_s14 + $0x158] sm:$0xff] (%p5976_p11) }
 0x1dd   : > { %4010 = vst.msk [vmem:[%s5694_s14 + $0x110] sm:$0xff] %vm336_vm1, %v4650_v56  ;;  %4078 = vst.msk [vmem:[%s5694_s14 + $0x170] sm:$0xff] %vm336_vm1, %v4662_v57  ;;  %v3688_v36 = vld [vmem:[%s5694_s14 + $0x150] sm:$0xff] (%p5976_p11) }
 0x1de   : > { %3605 = vst [vmem:[%s5858_s11] sm:$0xff] %v3604_v24  ;;  %3665 = vst [vmem:[%s5858_s11 + $0x270] sm:$0xff] %v3664_v23 }
 0x1df   : > { %3667 = vst [vmem:[%s5858_s11 + $0x278] sm:$0xff] %v3666_v25  ;;  %v3670_v27 = vld [vmem:[%s5694_s14 + $0x108] sm:$0xff]  ;;  %3689 = vst [vmem:[%s5858_s11 + $0x390] sm:$0xff] %v3688_v36 }
 0x1e0   : > { %v3668_v26 = vld [vmem:[%s5694_s14 + $0x100] sm:$0xff]  ;;  %3671 = vst [vmem:[%s5858_s11 + $0x288] sm:$0xff] %v3670_v27  ;;  %3691 = vst [vmem:[%s5858_s11 + $0x398] sm:$0xff] %v3690_v37  ;;  %v3694_v39 = vld [vmem:[%s5694_s14 + $0x168] sm:$0xff] }
 0x1e1   : > { %3669 = vst [vmem:[%s5858_s11 + $0x280] sm:$0xff] %v3668_v26  ;;  %v3692_v38 = vld [vmem:[%s5694_s14 + $0x160] sm:$0xff]  ;;  %3695 = vst [vmem:[%s5858_s11 + $0x3a8] sm:$0xff] %v3694_v39 }
 0x1e2   : > { %3693 = vst [vmem:[%s5858_s11 + $0x3a0] sm:$0xff] %v3692_v38 }
 0x1e3   : > { %v3674_v29 = vld [vmem:[%s5694_s14 + $0x118] sm:$0xff] }
 0x1e4   : > { %v3672_v28 = vld [vmem:[%s5694_s14 + $0x110] sm:$0xff]  ;;  %3675 = vst [vmem:[%s5858_s11 + $0x298] sm:$0xff] %v3674_v29  ;;  %v3698_v41 = vld [vmem:[%s5694_s14 + $0x178] sm:$0xff] }
 0x1e5   : > { %3673 = vst [vmem:[%s5858_s11 + $0x290] sm:$0xff] %v3672_v28  ;;  %v3696_v40 = vld [vmem:[%s5694_s14 + $0x170] sm:$0xff]  ;;  %3699 = vst [vmem:[%s5858_s11 + $0x3b8] sm:$0xff] %v3698_v41 }
 0x1e6   : > { %3697 = vst [vmem:[%s5858_s11 + $0x3b0] sm:$0xff] %v3696_v40 }
 0x1e7 PF: > { %s15_s21 = sadd.s32 1, %s4965_s21   ;;  %s5977_s15 = smov %s4945_s16 }
 0x1e8   : > { %p12_p13 = scmp.ge.s32.totalorder %s15_s21, 8   ;;  %s5978_s16 = smov %s5066_s9 }
 0x1e9   : > { %s5979_s17 = smov %s4957_s19  ;;  %s5980_s18 = smov %s4961_s20 }
 0x1ea   : > { %s5981_s19 = smov %s5984_s23  ;;  %s5982_s20 = smov %s5988_s24 }
 0x1eb   :  { %14 = sbr.rel (!%p12_p13) target bundleno = 4 (0x4), region = 133 }
 0x1f2   :  { %3715 = vsyncpa [#allocation4], 1 }
 0x1f3   :  { %3717 = vsyncpa [#allocation4 + $0x1], 1 }

</bundles_post_ra>
